<compile_context>
chip_gen: v7x
topology: tpu7x:2x2x1
jax: 0.10.0
libtpu: 0.0.40
codegen_flags: <defaults>
</compile_context>

<pallas_src>
import functools
import math

import jax
import jax.numpy as jnp
import numpy as np
from jax.experimental import pallas as pl
from jax.experimental.pallas import tpu as pltpu

EPS = 1e-5
NEG_SLOPE = 0.01  # nn.LeakyReLU() default negative_slope
VMEM_LIMIT = 48 * 1024 * 1024  # leave headroom vs v7x's 64 MiB physical VMEM


# --------------------------- Pallas kernels ---------------------------

def _stats_kernel(x_ref, sum_ref, sq_ref, *, total_rows, mask_rows):
    """Per-tile partial channel sum / sum-of-squares (rows >= total_rows masked)."""
    x = x_ref[...].astype(jnp.float32)
    if mask_rows:  # only emitted when the row tiling does not divide total_rows
        i = pl.program_id(0)
        rows = jax.lax.broadcasted_iota(jnp.int32, x.shape, 0) + i * x.shape[0]
        x = jnp.where(rows < total_rows, x, 0.0)
    sum_ref[0] = jnp.sum(x, axis=0, keepdims=True)
    sq_ref[0] = jnp.sum(x * x, axis=0, keepdims=True)


def _conv1_kernel(xm_ref, xh_ref, hm_ref, hh_ref, wm_ref, scale_ref, shift_ref,
                  w_ref, y_ref, sum_ref, sq_ref):
    """bn1 affine + LeakyReLU + hoisted zero-pad masks + 4x4/s2 conv (as a 2x2/s1
    conv over the space-to-depth input, width taps fused into the matmul K dim)
    + resident per-image partial bn2 statistics of the f32 accumulator."""
    _, th, wp, c1f = xm_ref.shape
    wo = wp - 1
    cout = y_ref.shape[3]
    r = pl.program_id(1)

    scale = scale_ref[...]
    shift = shift_ref[...]
    wmask = wm_ref[...]

    def act(x, hmask):
        a = x * scale + shift
        a = jnp.where(a >= 0, a, NEG_SLOPE * a)
        return a * hmask * wmask        # re-zero the conv's zero-padding positions

    xm = act(xm_ref[0], hm_ref[...])    # (th, wp, c1f)
    xh = act(xh_ref[0], hh_ref[...])    # (1,  wp, c1f) halo row
    xw = jnp.concatenate([xm, xh], axis=0)                        # (th+1, wp, c1f)

    # Fuse the two width taps into one K = 2*c1f operand (denser MXU K dim).
    lr = jnp.concatenate([xw[:, 0:wo, :], xw[:, 1:wo + 1, :]],
                         axis=-1).astype(jnp.bfloat16)            # (th+1, wo, 2*c1f)

    acc = jnp.dot(lr[0:th].reshape(th * wo, 2 * c1f), w_ref[0],
                  preferred_element_type=jnp.float32)
    acc = acc + jnp.dot(lr[1:th + 1].reshape(th * wo, 2 * c1f), w_ref[1],
                        preferred_element_type=jnp.float32)

    # conv1 bias intentionally omitted: a per-channel constant is exactly cancelled
    # by the batch-statistics BatchNorm that follows.
    y_ref[0] = acc.reshape(th, wo, cout).astype(y_ref.dtype)

    # bn2 partial statistics from the f32 accumulator, accumulated into the
    # resident per-image output block (one HBM writeback per image, not per tile).
    @pl.when(r == 0)
    def _():
        sum_ref[...] = jnp.zeros_like(sum_ref)
        sq_ref[...] = jnp.zeros_like(sq_ref)

    sum_ref[0] += jnp.sum(acc, axis=0, keepdims=True)
    sq_ref[0] += jnp.sum(acc * acc, axis=0, keepdims=True)


def _conv2_kernel(ym_ref, yt_ref, yb_ref, scale_ref, shift_ref, w_ref, b_ref, o_ref):
    """bn2 affine + LeakyReLU + 3x3/s1 conv with per-tile halo rows (no full-image
    padded scratch); the 3 width taps are fused into one K=3*c2 operand per row."""
    _, th, wo, c2 = ym_ref.shape
    r = pl.program_id(1)
    last = pl.num_programs(1) - 1

    scale = scale_ref[...]
    shift = shift_ref[...]

    def act(y):
        a = y.astype(jnp.float32) * scale + shift
        return jnp.where(a >= 0, a, NEG_SLOPE * a)

    top = act(yt_ref[0]) * jnp.where(r == 0, 0.0, 1.0)     # zero row above the image
    mid = act(ym_ref[0])
    bot = act(yb_ref[0]) * jnp.where(r == last, 0.0, 1.0)  # zero row below the image

    win = jnp.concatenate([top, mid, bot], axis=0).astype(jnp.bfloat16)  # (th+2,wo,c2)
    zcol = jnp.zeros((th + 2, 1, c2), jnp.bfloat16)
    wl = jnp.concatenate([zcol, win[:, :wo - 1, :]], axis=1)  # kw=0 tap (shift right)
    wr = jnp.concatenate([win[:, 1:, :], zcol], axis=1)       # kw=2 tap (shift left)

    acc = jnp.zeros((th * wo, c2), jnp.float32)
    for i in range(3):
        tap = jnp.concatenate([wl[i:i + th], win[i:i + th], wr[i:i + th]], axis=-1)
        acc = acc + jnp.dot(tap.reshape(th * wo, 3 * c2), w_ref[i],
                            preferred_element_type=jnp.float32)

    o_ref[0] = (acc + b_ref[...]).reshape(th, wo, c2)


# ----------------------------- wrappers -----------------------------

def _row_tile(ho, wo, target_rows=1024):
    """Largest divisor of ho whose tile has at most ~target_rows matmul rows."""
    # TODO(synk): allow non-divisor tiles (pl.cdiv grid + output-row masking) so
    # image heights with poor divisors don't degenerate to 1-row tiles.
    best = 1
    for d in range(1, ho + 1):
        if ho % d == 0 and d * wo <= max(target_rows, wo):
            best = d
    return best


def channel_sums(x2d):
    """x2d: [M, C] -> per-channel (sum, sum of squares) via tiled Pallas reduction."""
    M, C = x2d.shape
    tm = min(M, 1024)
    g = pl.cdiv(M, tm)
    s, q = pl.pallas_call(
        functools.partial(_stats_kernel, total_rows=M, mask_rows=(M % tm != 0)),
        out_shape=(jax.ShapeDtypeStruct((g, 1, C), jnp.float32),
                   jax.ShapeDtypeStruct((g, 1, C), jnp.float32)),
        grid=(g,),
        in_specs=[pl.BlockSpec((tm, C), lambda i: (i, 0))],
        out_specs=(pl.BlockSpec((1, 1, C), lambda i: (i, 0, 0)),
                   pl.BlockSpec((1, 1, C), lambda i: (i, 0, 0))),
        compiler_params=pltpu.CompilerParams(dimension_semantics=("parallel",)),
    )(x2d)
    return s.sum(axis=(0, 1)), q.sum(axis=(0, 1))


def conv1_bn1_lrelu(xs, hmask, wmask, scale1f, shift1f, w1, *, th):
    N, hp, wp, c1f = xs.shape
    ho, wo = hp - 1, wp - 1
    cout = w1.shape[2]
    gh = ho // th
    return pl.pallas_call(
        _conv1_kernel,
        out_shape=(jax.ShapeDtypeStruct((N, ho, wo, cout), jnp.bfloat16),
                   jax.ShapeDtypeStruct((N, 1, cout), jnp.float32),
                   jax.ShapeDtypeStruct((N, 1, cout), jnp.float32)),
        grid=(N, gh),
        in_specs=[
            # main rows [r*th, r*th+th) plus a single halo row r*th+th (xs is padded,
            # so the halo row of the last tile is exactly the bottom padding row).
            pl.BlockSpec((1, th, wp, c1f), lambda n, r: (n, r, 0, 0)),
            pl.BlockSpec((1, 1, wp, c1f), lambda n, r: (n, r * th + th, 0, 0)),
            pl.BlockSpec((th, 1, c1f), lambda n, r: (r, 0, 0)),          # hmask main
            pl.BlockSpec((1, 1, c1f), lambda n, r: (r * th + th, 0, 0)),  # hmask halo
            pl.BlockSpec((1, wp, c1f), lambda n, r: (0, 0, 0)),           # wmask
            pl.BlockSpec((1, c1f), lambda n, r: (0, 0)),                  # bn1 scale
            pl.BlockSpec((1, c1f), lambda n, r: (0, 0)),                  # bn1 shift
            pl.BlockSpec((2, 2 * c1f, cout), lambda n, r: (0, 0, 0)),     # w1 (bf16)
        ],
        out_specs=(
            pl.BlockSpec((1, th, wo, cout), lambda n, r: (n, r, 0, 0)),
            pl.BlockSpec((1, 1, cout), lambda n, r: (n, 0, 0)),           # bn2 sums
            pl.BlockSpec((1, 1, cout), lambda n, r: (n, 0, 0)),           # bn2 sumsq
        ),
        compiler_params=pltpu.CompilerParams(
            dimension_semantics=("parallel", "arbitrary"),
            vmem_limit_bytes=VMEM_LIMIT),
    )(xs, xs, hmask, hmask, wmask, scale1f, shift1f, w1)


def conv2_bn2_lrelu(y, scale2, shift2, w2, b2, *, th):
    N, ho, wo, c2 = y.shape
    gh = ho // th
    return pl.pallas_call(
        _conv2_kernel,
        out_shape=jax.ShapeDtypeStruct((N, ho, wo, c2), jnp.float32),
        grid=(N, gh),
        in_specs=[
            pl.BlockSpec((1, th, wo, c2), lambda n, r: (n, r, 0, 0)),
            # halo rows above/below the tile, clamped to the image (zeroed in-kernel
            # at the true image borders).
            pl.BlockSpec((1, 1, wo, c2),
                         lambda n, r: (n, jnp.maximum(r * th - 1, 0), 0, 0)),
            pl.BlockSpec((1, 1, wo, c2),
                         lambda n, r: (n, jnp.minimum(r * th + th, ho - 1), 0, 0)),
            pl.BlockSpec((1, c2), lambda n, r: (0, 0)),                  # bn2 scale
            pl.BlockSpec((1, c2), lambda n, r: (0, 0)),                  # bn2 shift
            pl.BlockSpec((3, 3 * c2, c2), lambda n, r: (0, 0, 0)),       # w2 (bf16)
            pl.BlockSpec((1, c2), lambda n, r: (0, 0)),                  # bias
        ],
        out_specs=pl.BlockSpec((1, th, wo, c2), lambda n, r: (n, r, 0, 0)),
        compiler_params=pltpu.CompilerParams(
            dimension_semantics=("parallel", "parallel"),
            vmem_limit_bytes=VMEM_LIMIT),
    )(y, y, y, scale2, shift2, w2, b2)


def encoder_block_forward(x_nchw, params):
    """Full EncoderBlock forward. Input/Output are NCHW float32."""
    N, cin, H, W = x_nchw.shape
    cout = params["conv1_w"].shape[0]
    assert H % 2 == 0 and W % 2 == 0, "k=4/s=2/p=1 path assumes even H, W"
    ho, wo = H // 2, W // 2
    hp, wp = ho + 1, wo + 1
    c1f = 4 * cin

    x = jnp.transpose(x_nchw, (0, 2, 3, 1)).astype(jnp.float32)  # NHWC

    # ---- bn1 batch statistics on the raw input (independent of the relayout) ----
    s1, q1 = channel_sums(x.reshape(N * H * W, cin))
    cnt1 = N * H * W
    mean1 = s1 / cnt1
    # TODO(synk): use a Welford-style combine for better numerics at production counts.
    var1 = jnp.maximum(q1 / cnt1 - mean1 * mean1, 0.0)
    scale1 = params["bn1_gamma"].reshape(-1) / jnp.sqrt(var1 + EPS)
    shift1 = params["bn1_beta"].reshape(-1) - mean1 * scale1
    scale1f = jnp.tile(scale1, 4).reshape(1, c1f)   # folded (plane, cin) order
    shift1f = jnp.tile(shift1, 4).reshape(1, c1f)

    # Zero-pad by 1 and space-to-depth (2x2): stride-2 4x4 conv becomes a stride-1
    # 2x2 conv over 4*cin folded channels (layout plumbing, done once by XLA).
    # TODO(synk): fuse bn1 stats + this relayout into one Pallas kernel to save a read.
    xp = jnp.pad(x, ((0, 0), (1, 1), (1, 1), (0, 0)))
    xs = xp.reshape(N, hp, 2, wp, 2, cin).transpose(0, 1, 3, 2, 4, 5)
    xs = xs.reshape(N, hp, wp, c1f)

    # Hoisted padding masks (padding is applied to the *activated* map in the
    # reference, so it must be re-zeroed after bn1+LeakyReLU inside the kernel).
    plane = jnp.arange(c1f) // cin
    ri = plane // 2
    rj = plane % 2
    wmask = jnp.ones((wp, c1f), jnp.float32)
    wmask = wmask.at[0].set((rj != 0).astype(jnp.float32))
    wmask = wmask.at[wp - 1].set((rj != 1).astype(jnp.float32))
    wmask = wmask.reshape(1, wp, c1f)
    hmask = jnp.ones((hp, c1f), jnp.float32)
    hmask = hmask.at[0].set((ri != 0).astype(jnp.float32))
    hmask = hmask.at[hp - 1].set((ri != 1).astype(jnp.float32))
    hmask = hmask.reshape(hp, 1, c1f)

    # conv1 weights folded for space-to-depth + width-tap fusion (bias dropped: a
    # per-channel constant is exactly cancelled by the batch-stat BN2 that follows).
    w1 = jnp.transpose(params["conv1_w"], (2, 3, 1, 0))            # (4,4,cin,cout) HWIO
    w1 = w1.reshape(2, 2, 2, 2, cin, cout).transpose(0, 2, 1, 3, 4, 5)  # (a,b,ri,rj,c,o)
    w1 = w1.reshape(2, 2 * c1f, cout).astype(jnp.bfloat16)

    th1 = _row_tile(ho, wo)
    y, ysum, ysq = conv1_bn1_lrelu(xs, hmask, wmask, scale1f, shift1f, w1, th=th1)

    # ---- bn2 batch statistics from the f32 accumulator side-outputs ----
    cnt2 = N * ho * wo
    s2 = ysum.sum(axis=(0, 1))
    q2 = ysq.sum(axis=(0, 1))
    mean2 = s2 / cnt2
    var2 = jnp.maximum(q2 / cnt2 - mean2 * mean2, 0.0)
    scale2 = params["bn2_gamma"].reshape(-1) / jnp.sqrt(var2 + EPS)
    shift2 = params["bn2_beta"].reshape(-1) - mean2 * scale2

    # conv2 weights: HWIO, (kw, cin) fused into the matmul K dim per kernel row.
    w2 = jnp.transpose(params["conv2_w"], (2, 3, 1, 0)).reshape(3, 3 * cout, cout)
    w2 = w2.astype(jnp.bfloat16)
    b2 = params["conv2_b"].reshape(1, cout).astype(jnp.float32)

    th2 = _row_tile(ho, wo)
    out = conv2_bn2_lrelu(y, scale2.reshape(1, cout), shift2.reshape(1, cout),
                          w2, b2, th=th2)
    return jnp.transpose(out, (0, 3, 1, 2))  # NCHW


# ----------------------- pure-JAX reference -----------------------

def reference_forward(x_nchw, params):
    x = x_nchw.astype(jnp.float32)

    def bn(h, gamma, beta):
        m = jnp.mean(h, axis=(0, 2, 3), keepdims=True)
        v = jnp.mean((h - m) ** 2, axis=(0, 2, 3), keepdims=True)
        return (h - m) / jnp.sqrt(v + EPS) * gamma.reshape(1, -1, 1, 1) \
            + beta.reshape(1, -1, 1, 1)

    def lrelu(h):
        return jnp.where(h >= 0, h, NEG_SLOPE * h)

    def conv(h, w, b, stride, pad):
        y = jax.lax.conv_general_dilated(
            h, w, (stride, stride), ((pad, pad), (pad, pad)),
            dimension_numbers=("NCHW", "OIHW", "NCHW"))
        return y + b.reshape(1, -1, 1, 1)

    h = lrelu(bn(x, params["bn1_gamma"], params["bn1_beta"]))
    h = conv(h, params["conv1_w"], params["conv1_b"], 2, 1)
    h = lrelu(bn(h, params["bn2_gamma"], params["bn2_beta"]))
    h = conv(h, params["conv2_w"], params["conv2_b"], 1, 1)
    return h


# ----------------------- setup & run -----------------------

def init_params(key, input_nc, output_nc):
    def conv_init(k, cout, cin, kh, kw):
        fan_in = cin * kh * kw
        bound = 1.0 / math.sqrt(fan_in)
        kw_, kb_ = jax.random.split(k)
        w = jax.random.uniform(kw_, (cout, cin, kh, kw), jnp.float32, -bound, bound)
        b = jax.random.uniform(kb_, (cout,), jnp.float32, -bound, bound)
        return w, b

    k1, k2 = jax.random.split(key)
    w1, b1 = conv_init(k1, output_nc, input_nc, 4, 4)
    w2, b2 = conv_init(k2, output_nc, output_nc, 3, 3)
    return {
        "bn1_gamma": jnp.ones((1, input_nc), jnp.float32),
        "bn1_beta": jnp.zeros((1, input_nc), jnp.float32),
        "bn2_gamma": jnp.ones((1, output_nc), jnp.float32),
        "bn2_beta": jnp.zeros((1, output_nc), jnp.float32),
        "conv1_w": w1, "conv1_b": b1,
        "conv2_w": w2, "conv2_b": b2,
    }


if __name__ == "__main__":
    key = jax.random.PRNGKey(0)
    kp, kx = jax.random.split(key)

    N, Cin, H, W = 2, 4, 16, 16
    Cout = 8
    params = init_params(kp, Cin, Cout)
    x = jax.random.normal(kx, (N, Cin, H, W), jnp.float32)

    fwd = jax.jit(encoder_block_forward)
    out = jax.block_until_ready(fwd(x, params))
    assert out.shape == (N, Cout, H // 2, W // 2), out.shape

    ref = jax.block_until_ready(reference_forward(x, params))
    np.testing.assert_allclose(np.asarray(out), np.asarray(ref),
                               rtol=5e-2, atol=5e-2)

    print("KERNEL_OK")
</pallas_src>

<mosaic_0001>
module attributes {stable_mosaic.version = 11 : i64} {
  func.func @_stats_kernel(%arg0: i32, %arg1: memref<512x4xf32, #tpu.memory_space<vmem>>, %arg2: memref<1x1x4xf32, #tpu.memory_space<vmem>>, %arg3: memref<1x1x4xf32, #tpu.memory_space<vmem>>) attributes {dimension_semantics = [#tpu.dimension_semantics<parallel>], iteration_bounds = array<i64: 1>, scalar_prefetch = 0 : i64, scratch_operands = 0 : i64, tpu.core_type = #tpu.core_type<tc>, window_params = [{transform_indices = @transform_0, window_bounds = array<i64: 512, 4>}, {transform_indices = @transform_1, window_bounds = array<i64: 1, 1, 4>}, {transform_indices = @transform_2, window_bounds = array<i64: 1, 1, 4>}]} {
    %c0 = arith.constant 0 : index
    %c0_0 = arith.constant 0 : index
    %0 = vector.load %arg1[%c0, %c0_0] : memref<512x4xf32, #tpu.memory_space<vmem>>, vector<512x4xf32>
    %cst = arith.constant dense<0.000000e+00> : vector<4xf32>
    %1 = vector.multi_reduction <add>, %0, %cst [0] : vector<512x4xf32> to vector<4xf32>
    %2 = vector.shape_cast %1 : vector<4xf32> to vector<1x4xf32>
    %c0_1 = arith.constant 0 : index
    %c0_2 = arith.constant 0 : index
    %c0_3 = arith.constant 0 : index
    %3 = vector.load %arg2[%c0_1, %c0_2, %c0_3] : memref<1x1x4xf32, #tpu.memory_space<vmem>>, vector<1x1x4xf32>
    %4 = vector.shape_cast %3 : vector<1x1x4xf32> to vector<1x4xf32>
    %5 = vector.shape_cast %2 : vector<1x4xf32> to vector<1x1x4xf32>
    tpu.vector_store %arg2[%c0_1, %c0_2, %c0_3], %5 {strides = array<i32>} : memref<1x1x4xf32, #tpu.memory_space<vmem>>, vector<1x1x4xf32>,
    %6 = arith.mulf %0, %0 : vector<512x4xf32>
    %cst_4 = arith.constant dense<0.000000e+00> : vector<4xf32>
    %7 = vector.multi_reduction <add>, %6, %cst_4 [0] : vector<512x4xf32> to vector<4xf32>
    %8 = vector.shape_cast %7 : vector<4xf32> to vector<1x4xf32>
    %c0_5 = arith.constant 0 : index
    %c0_6 = arith.constant 0 : index
    %c0_7 = arith.constant 0 : index
    %9 = vector.load %arg3[%c0_5, %c0_6, %c0_7] : memref<1x1x4xf32, #tpu.memory_space<vmem>>, vector<1x1x4xf32>
    %10 = vector.shape_cast %9 : vector<1x1x4xf32> to vector<1x4xf32>
    %11 = vector.shape_cast %8 : vector<1x4xf32> to vector<1x1x4xf32>
    tpu.vector_store %arg3[%c0_5, %c0_6, %c0_7], %11 {strides = array<i32>} : memref<1x1x4xf32, #tpu.memory_space<vmem>>, vector<1x1x4xf32>,
    return
  }
  func.func @transform_0(%arg0: i32) -> (i32, i32) {
    %c0_i32 = arith.constant 0 : i32
    %c0_i32_0 = arith.constant 0 : i32
    return %arg0, %c0_i32 : i32, i32
  }
  func.func @transform_1(%arg0: i32) -> (i32, i32, i32) {
    %c0_i32 = arith.constant 0 : i32
    %c0_i32_0 = arith.constant 0 : i32
    %c0_i32_1 = arith.constant 0 : i32
    return %arg0, %c0_i32, %c0_i32_0 : i32, i32, i32
  }
  func.func @transform_2(%arg0: i32) -> (i32, i32, i32) {
    %c0_i32 = arith.constant 0 : i32
    %c0_i32_0 = arith.constant 0 : i32
    %c0_i32_1 = arith.constant 0 : i32
    return %arg0, %c0_i32, %c0_i32_0 : i32, i32, i32
  }
}

module attributes {stable_mosaic.version = 11 : i64} {
  func.func @_conv2_kernel(%arg0: i32, %arg1: i32, %arg2: memref<1x8x8x8xbf16, #tpu.memory_space<vmem>>, %arg3: memref<1x1x8x8xbf16, #tpu.memory_space<vmem>>, %arg4: memref<1x1x8x8xbf16, #tpu.memory_space<vmem>>, %arg5: memref<1x8xf32, #tpu.memory_space<vmem>>, %arg6: memref<1x8xf32, #tpu.memory_space<vmem>>, %arg7: memref<3x24x8xbf16, #tpu.memory_space<vmem>>, %arg8: memref<1x8xf32, #tpu.memory_space<vmem>>, %arg9: memref<1x8x8x8xf32, #tpu.memory_space<vmem>>) attributes {dimension_semantics = [#tpu.dimension_semantics<parallel>, #tpu.dimension_semantics<parallel>], iteration_bounds = array<i64: 2, 1>, scalar_prefetch = 0 : i64, scratch_operands = 0 : i64, tpu.core_type = #tpu.core_type<tc>, window_params = [{transform_indices = @transform_0, window_bounds = array<i64: 1, 8, 8, 8>}, {transform_indices = @transform_1, window_bounds = array<i64: 1, 1, 8, 8>}, {transform_indices = @transform_2, window_bounds = array<i64: 1, 1, 8, 8>}, {pipeline_mode = #tpu.pipeline_mode<synchronous>, transform_indices = @transform_3, window_bounds = array<i64: 1, 8>}, {pipeline_mode = #tpu.pipeline_mode<synchronous>, transform_indices = @transform_4, window_bounds = array<i64: 1, 8>}, {pipeline_mode = #tpu.pipeline_mode<synchronous>, transform_indices = @transform_5, window_bounds = array<i64: 3, 24, 8>}, {pipeline_mode = #tpu.pipeline_mode<synchronous>, transform_indices = @transform_6, window_bounds = array<i64: 1, 8>}, {transform_indices = @transform_7, window_bounds = array<i64: 1, 8, 8, 8>}]} {
    %c0 = arith.constant 0 : index
    %c0_0 = arith.constant 0 : index
    %0 = vector.load %arg5[%c0, %c0_0] : memref<1x8xf32, #tpu.memory_space<vmem>>, vector<1x8xf32>
    %c0_1 = arith.constant 0 : index
    %c0_2 = arith.constant 0 : index
    %1 = vector.load %arg6[%c0_1, %c0_2] : memref<1x8xf32, #tpu.memory_space<vmem>>, vector<1x8xf32>
    %c0_3 = arith.constant 0 : index
    %c0_4 = arith.constant 0 : index
    %c0_5 = arith.constant 0 : index
    %c0_6 = arith.constant 0 : index
    %2 = vector.load %arg3[%c0_3, %c0_4, %c0_5, %c0_6] : memref<1x1x8x8xbf16, #tpu.memory_space<vmem>>, vector<1x1x8x8xbf16>
    %3 = vector.shape_cast %2 : vector<1x1x8x8xbf16> to vector<1x8x8xbf16>
    %4 = arith.extf %3 : vector<1x8x8xbf16> to vector<1x8x8xf32>
    %5 = vector.shape_cast %0 : vector<1x8xf32> to vector<1x1x8xf32>
    %6 = vector.broadcast %5 : vector<1x1x8xf32> to vector<1x8x8xf32>
    %7 = arith.mulf %4, %6 : vector<1x8x8xf32>
    %8 = vector.shape_cast %1 : vector<1x8xf32> to vector<1x1x8xf32>
    %9 = vector.broadcast %8 : vector<1x1x8xf32> to vector<1x8x8xf32>
    %10 = arith.addf %7, %9 : vector<1x8x8xf32>
    %cst = arith.constant 0.000000e+00 : f32
    %11 = vector.broadcast %cst : f32 to vector<1x8x8xf32>
    %12 = arith.cmpf oge, %10, %11 : vector<1x8x8xf32>
    %cst_7 = arith.constant 0.00999999977 : f32
    %13 = vector.broadcast %cst_7 : f32 to vector<1x8x8xf32>
    %14 = arith.mulf %13, %10 : vector<1x8x8xf32>
    %15 = arith.select %12, %10, %14 : vector<1x8x8xi1>, vector<1x8x8xf32>
    %c0_i32 = arith.constant 0 : i32
    %16 = arith.cmpi eq, %arg1, %c0_i32 : i32
    %cst_8 = arith.constant 0.000000e+00 : f32
    %cst_9 = arith.constant 1.000000e+00 : f32
    %17 = arith.select %16, %cst_8, %cst_9 : f32
    %18 = vector.broadcast %17 : f32 to vector<1x8x8xf32>
    %19 = arith.mulf %15, %18 : vector<1x8x8xf32>
    %c0_10 = arith.constant 0 : index
    %c0_11 = arith.constant 0 : index
    %c0_12 = arith.constant 0 : index
    %c0_13 = arith.constant 0 : index
    %20 = vector.load %arg2[%c0_10, %c0_11, %c0_12, %c0_13] : memref<1x8x8x8xbf16, #tpu.memory_space<vmem>>, vector<1x8x8x8xbf16>
    %21 = vector.shape_cast %20 : vector<1x8x8x8xbf16> to vector<8x8x8xbf16>
    %22 = arith.extf %21 : vector<8x8x8xbf16> to vector<8x8x8xf32>
    %23 = vector.shape_cast %0 : vector<1x8xf32> to vector<1x1x8xf32>
    %24 = vector.broadcast %23 : vector<1x1x8xf32> to vector<8x8x8xf32>
    %25 = arith.mulf %22, %24 : vector<8x8x8xf32>
    %26 = vector.shape_cast %1 : vector<1x8xf32> to vector<1x1x8xf32>
    %27 = vector.broadcast %26 : vector<1x1x8xf32> to vector<8x8x8xf32>
    %28 = arith.addf %25, %27 : vector<8x8x8xf32>
    %cst_14 = arith.constant 0.000000e+00 : f32
    %29 = vector.broadcast %cst_14 : f32 to vector<8x8x8xf32>
    %30 = arith.cmpf oge, %28, %29 : vector<8x8x8xf32>
    %cst_15 = arith.constant 0.00999999977 : f32
    %31 = vector.broadcast %cst_15 : f32 to vector<8x8x8xf32>
    %32 = arith.mulf %31, %28 : vector<8x8x8xf32>
    %33 = arith.select %30, %28, %32 : vector<8x8x8xi1>, vector<8x8x8xf32>
    %c0_16 = arith.constant 0 : index
    %c0_17 = arith.constant 0 : index
    %c0_18 = arith.constant 0 : index
    %c0_19 = arith.constant 0 : index
    %34 = vector.load %arg4[%c0_16, %c0_17, %c0_18, %c0_19] : memref<1x1x8x8xbf16, #tpu.memory_space<vmem>>, vector<1x1x8x8xbf16>
    %35 = vector.shape_cast %34 : vector<1x1x8x8xbf16> to vector<1x8x8xbf16>
    %36 = arith.extf %35 : vector<1x8x8xbf16> to vector<1x8x8xf32>
    %37 = vector.shape_cast %0 : vector<1x8xf32> to vector<1x1x8xf32>
    %38 = vector.broadcast %37 : vector<1x1x8xf32> to vector<1x8x8xf32>
    %39 = arith.mulf %36, %38 : vector<1x8x8xf32>
    %40 = vector.shape_cast %1 : vector<1x8xf32> to vector<1x1x8xf32>
    %41 = vector.broadcast %40 : vector<1x1x8xf32> to vector<1x8x8xf32>
    %42 = arith.addf %39, %41 : vector<1x8x8xf32>
    %cst_20 = arith.constant 0.000000e+00 : f32
    %43 = vector.broadcast %cst_20 : f32 to vector<1x8x8xf32>
    %44 = arith.cmpf oge, %42, %43 : vector<1x8x8xf32>
    %cst_21 = arith.constant 0.00999999977 : f32
    %45 = vector.broadcast %cst_21 : f32 to vector<1x8x8xf32>
    %46 = arith.mulf %45, %42 : vector<1x8x8xf32>
    %47 = arith.select %44, %42, %46 : vector<1x8x8xi1>, vector<1x8x8xf32>
    %c0_i32_22 = arith.constant 0 : i32
    %48 = arith.cmpi eq, %arg1, %c0_i32_22 : i32
    %cst_23 = arith.constant 0.000000e+00 : f32
    %cst_24 = arith.constant 1.000000e+00 : f32
    %49 = arith.select %48, %cst_23, %cst_24 : f32
    %50 = vector.broadcast %49 : f32 to vector<1x8x8xf32>
    %51 = arith.mulf %47, %50 : vector<1x8x8xf32>
    %52 = tpu.concatenate %19, %33, %51 in 0 : vector<1x8x8xf32>, vector<8x8x8xf32>, vector<1x8x8xf32> -> vector<10x8x8xf32>
    %53 = arith.truncf %52 : vector<10x8x8xf32> to vector<10x8x8xbf16>
    %cst_25 = arith.constant 0.000000e+00 : bf16
    %54 = vector.broadcast %cst_25 : bf16 to vector<10x1x8xbf16>
    %55 = vector.extract_strided_slice %53 {offsets = [0, 0, 0], sizes = [10, 7, 8], strides = [1, 1, 1]} : vector<10x8x8xbf16> to vector<10x7x8xbf16>
    %56 = tpu.concatenate %54, %55 in 1 : vector<10x1x8xbf16>, vector<10x7x8xbf16> -> vector<10x8x8xbf16>
    %57 = vector.extract_strided_slice %53 {offsets = [0, 1, 0], sizes = [10, 7, 8], strides = [1, 1, 1]} : vector<10x8x8xbf16> to vector<10x7x8xbf16>
    %58 = tpu.concatenate %57, %54 in 1 : vector<10x7x8xbf16>, vector<10x1x8xbf16> -> vector<10x8x8xbf16>
    %cst_26 = arith.constant 0.000000e+00 : f32
    %59 = vector.broadcast %cst_26 : f32 to vector<64x8xf32>
    %60 = vector.extract_strided_slice %56 {offsets = [0, 0, 0], sizes = [8, 8, 8], strides = [1, 1, 1]} : vector<10x8x8xbf16> to vector<8x8x8xbf16>
    %61 = vector.extract_strided_slice %53 {offsets = [0, 0, 0], sizes = [8, 8, 8], strides = [1, 1, 1]} : vector<10x8x8xbf16> to vector<8x8x8xbf16>
    %62 = vector.extract_strided_slice %58 {offsets = [0, 0, 0], sizes = [8, 8, 8], strides = [1, 1, 1]} : vector<10x8x8xbf16> to vector<8x8x8xbf16>
    %63 = tpu.concatenate %60, %61, %62 in 2 : vector<8x8x8xbf16>, vector<8x8x8xbf16>, vector<8x8x8xbf16> -> vector<8x8x24xbf16>
    %64 = vector.shape_cast %63 : vector<8x8x24xbf16> to vector<64x24xbf16>
    %c0_27 = arith.constant 0 : index
    %c0_28 = arith.constant 0 : index
    %c0_29 = arith.constant 0 : index
    %65 = vector.load %arg7[%c0_27, %c0_28, %c0_29] : memref<3x24x8xbf16, #tpu.memory_space<vmem>>, vector<1x24x8xbf16>
    %66 = vector.shape_cast %65 : vector<1x24x8xbf16> to vector<24x8xbf16>
    %cst_30 = arith.constant dense<0.000000e+00> : vector<64x8xf32>
    %67 = tpu.matmul %64, %66, %cst_30 {dimension_numbers = #tpu.dot_dimension_numbers<[1], [0], [0], [1], [0, 0, 1, 1], [], []>} : vector<64x24xbf16>, vector<24x8xbf16>, vector<64x8xf32> -> vector<64x8xf32>
    %68 = arith.addf %59, %67 : vector<64x8xf32>
    %69 = vector.extract_strided_slice %56 {offsets = [1, 0, 0], sizes = [8, 8, 8], strides = [1, 1, 1]} : vector<10x8x8xbf16> to vector<8x8x8xbf16>
    %70 = vector.extract_strided_slice %53 {offsets = [1, 0, 0], sizes = [8, 8, 8], strides = [1, 1, 1]} : vector<10x8x8xbf16> to vector<8x8x8xbf16>
    %71 = vector.extract_strided_slice %58 {offsets = [1, 0, 0], sizes = [8, 8, 8], strides = [1, 1, 1]} : vector<10x8x8xbf16> to vector<8x8x8xbf16>
    %72 = tpu.concatenate %69, %70, %71 in 2 : vector<8x8x8xbf16>, vector<8x8x8xbf16>, vector<8x8x8xbf16> -> vector<8x8x24xbf16>
    %73 = vector.shape_cast %72 : vector<8x8x24xbf16> to vector<64x24xbf16>
    %c1 = arith.constant 1 : index
    %c0_31 = arith.constant 0 : index
    %c0_32 = arith.constant 0 : index
    %74 = vector.load %arg7[%c1, %c0_31, %c0_32] : memref<3x24x8xbf16, #tpu.memory_space<vmem>>, vector<1x24x8xbf16>
    %75 = vector.shape_cast %74 : vector<1x24x8xbf16> to vector<24x8xbf16>
    %cst_33 = arith.constant dense<0.000000e+00> : vector<64x8xf32>
    %76 = tpu.matmul %73, %75, %cst_33 {dimension_numbers = #tpu.dot_dimension_numbers<[1], [0], [0], [1], [0, 0, 1, 1], [], []>} : vector<64x24xbf16>, vector<24x8xbf16>, vector<64x8xf32> -> vector<64x8xf32>
    %77 = arith.addf %68, %76 : vector<64x8xf32>
    %78 = vector.extract_strided_slice %56 {offsets = [2, 0, 0], sizes = [8, 8, 8], strides = [1, 1, 1]} : vector<10x8x8xbf16> to vector<8x8x8xbf16>
    %79 = vector.extract_strided_slice %53 {offsets = [2, 0, 0], sizes = [8, 8, 8], strides = [1, 1, 1]} : vector<10x8x8xbf16> to vector<8x8x8xbf16>
    %80 = vector.extract_strided_slice %58 {offsets = [2, 0, 0], sizes = [8, 8, 8], strides = [1, 1, 1]} : vector<10x8x8xbf16> to vector<8x8x8xbf16>
    %81 = tpu.concatenate %78, %79, %80 in 2 : vector<8x8x8xbf16>, vector<8x8x8xbf16>, vector<8x8x8xbf16> -> vector<8x8x24xbf16>
    %82 = vector.shape_cast %81 : vector<8x8x24xbf16> to vector<64x24xbf16>
    %c2 = arith.constant 2 : index
    %c0_34 = arith.constant 0 : index
    %c0_35 = arith.constant 0 : index
    %83 = vector.load %arg7[%c2, %c0_34, %c0_35] : memref<3x24x8xbf16, #tpu.memory_space<vmem>>, vector<1x24x8xbf16>
    %84 = vector.shape_cast %83 : vector<1x24x8xbf16> to vector<24x8xbf16>
    %cst_36 = arith.constant dense<0.000000e+00> : vector<64x8xf32>
    %85 = tpu.matmul %82, %84, %cst_36 {dimension_numbers = #tpu.dot_dimension_numbers<[1], [0], [0], [1], [0, 0, 1, 1], [], []>} : vector<64x24xbf16>, vector<24x8xbf16>, vector<64x8xf32> -> vector<64x8xf32>
    %86 = arith.addf %77, %85 : vector<64x8xf32>
    %c0_37 = arith.constant 0 : index
    %c0_38 = arith.constant 0 : index
    %87 = vector.load %arg8[%c0_37, %c0_38] : memref<1x8xf32, #tpu.memory_space<vmem>>, vector<1x8xf32>
    %88 = vector.broadcast %87 : vector<1x8xf32> to vector<64x8xf32>
    %89 = arith.addf %86, %88 : vector<64x8xf32>
    %90 = vector.shape_cast %89 : vector<64x8xf32> to vector<8x8x8xf32>
    %c0_39 = arith.constant 0 : index
    %c0_40 = arith.constant 0 : index
    %c0_41 = arith.constant 0 : index
    %c0_42 = arith.constant 0 : index
    %91 = vector.load %arg9[%c0_39, %c0_40, %c0_41, %c0_42] : memref<1x8x8x8xf32, #tpu.memory_space<vmem>>, vector<1x8x8x8xf32>
    %92 = vector.shape_cast %91 : vector<1x8x8x8xf32> to vector<8x8x8xf32>
    %93 = vector.shape_cast %90 : vector<8x8x8xf32> to vector<1x8x8x8xf32>
    tpu.vector_store %arg9[%c0_39, %c0_40, %c0_41, %c0_42], %93 {strides = array<i32>} : memref<1x8x8x8xf32, #tpu.memory_space<vmem>>, vector<1x8x8x8xf32>,
    return
  }
  func.func @transform_0(%arg0: i32, %arg1: i32) -> (i32, i32, i32, i32) {
    %c0_i32 = arith.constant 0 : i32
    %c0_i32_0 = arith.constant 0 : i32
    %c0_i32_1 = arith.constant 0 : i32
    return %arg0, %arg1, %c0_i32, %c0_i32_0 : i32, i32, i32, i32
  }
  func.func @transform_1(%arg0: i32, %arg1: i32) -> (i32, i32, i32, i32) {
    %c8_i32 = arith.constant 8 : i32
    %0 = arith.muli %arg1, %c8_i32 : i32
    %c1_i32 = arith.constant 1 : i32
    %1 = arith.subi %0, %c1_i32 : i32
    %c0_i32 = arith.constant 0 : i32
    %2 = arith.maxsi %1, %c0_i32 : i32
    %c0_i32_0 = arith.constant 0 : i32
    %c0_i32_1 = arith.constant 0 : i32
    %c0_i32_2 = arith.constant 0 : i32
    return %arg0, %2, %c0_i32_0, %c0_i32_1 : i32, i32, i32, i32
  }
  func.func @transform_2(%arg0: i32, %arg1: i32) -> (i32, i32, i32, i32) {
    %c8_i32 = arith.constant 8 : i32
    %0 = arith.muli %arg1, %c8_i32 : i32
    %c8_i32_0 = arith.constant 8 : i32
    %1 = arith.addi %0, %c8_i32_0 : i32
    %c7_i32 = arith.constant 7 : i32
    %2 = arith.minsi %1, %c7_i32 : i32
    %c0_i32 = arith.constant 0 : i32
    %c0_i32_1 = arith.constant 0 : i32
    %c0_i32_2 = arith.constant 0 : i32
    return %arg0, %2, %c0_i32, %c0_i32_1 : i32, i32, i32, i32
  }
  func.func @transform_3(%arg0: i32, %arg1: i32) -> (i32, i32) {
    %c0_i32 = arith.constant 0 : i32
    %c0_i32_0 = arith.constant 0 : i32
    %c0_i32_1 = arith.constant 0 : i32
    return %c0_i32, %c0_i32_0 : i32, i32
  }
  func.func @transform_4(%arg0: i32, %arg1: i32) -> (i32, i32) {
    %c0_i32 = arith.constant 0 : i32
    %c0_i32_0 = arith.constant 0 : i32
    %c0_i32_1 = arith.constant 0 : i32
    return %c0_i32, %c0_i32_0 : i32, i32
  }
  func.func @transform_5(%arg0: i32, %arg1: i32) -> (i32, i32, i32) {
    %c0_i32 = arith.constant 0 : i32
    %c0_i32_0 = arith.constant 0 : i32
    %c0_i32_1 = arith.constant 0 : i32
    %c0_i32_2 = arith.constant 0 : i32
    return %c0_i32, %c0_i32_0, %c0_i32_1 : i32, i32, i32
  }
  func.func @transform_6(%arg0: i32, %arg1: i32) -> (i32, i32) {
    %c0_i32 = arith.constant 0 : i32
    %c0_i32_0 = arith.constant 0 : i32
    %c0_i32_1 = arith.constant 0 : i32
    return %c0_i32, %c0_i32_0 : i32, i32
  }
  func.func @transform_7(%arg0: i32, %arg1: i32) -> (i32, i32, i32, i32) {
    %c0_i32 = arith.constant 0 : i32
    %c0_i32_0 = arith.constant 0 : i32
    %c0_i32_1 = arith.constant 0 : i32
    return %arg0, %arg1, %c0_i32, %c0_i32_0 : i32, i32, i32, i32
  }
}

module attributes {stable_mosaic.version = 11 : i64} {
  func.func @_conv1_kernel(%arg0: i32, %arg1: i32, %arg2: memref<1x8x9x16xf32, #tpu.memory_space<vmem>>, %arg3: memref<1x1x9x16xf32, #tpu.memory_space<vmem>>, %arg4: memref<8x1x16xf32, #tpu.memory_space<vmem>>, %arg5: memref<1x1x16xf32, #tpu.memory_space<vmem>>, %arg6: memref<1x9x16xf32, #tpu.memory_space<vmem>>, %arg7: memref<1x16xf32, #tpu.memory_space<vmem>>, %arg8: memref<1x16xf32, #tpu.memory_space<vmem>>, %arg9: memref<2x32x8xbf16, #tpu.memory_space<vmem>>, %arg10: memref<1x8x8x8xbf16, #tpu.memory_space<vmem>>, %arg11: memref<1x1x8xf32, #tpu.memory_space<vmem>>, %arg12: memref<1x1x8xf32, #tpu.memory_space<vmem>>) attributes {dimension_semantics = [#tpu.dimension_semantics<parallel>, #tpu.dimension_semantics<arbitrary>], iteration_bounds = array<i64: 2, 1>, scalar_prefetch = 0 : i64, scratch_operands = 0 : i64, tpu.core_type = #tpu.core_type<tc>, window_params = [{transform_indices = @transform_0, window_bounds = array<i64: 1, 8, 9, 16>}, {transform_indices = @transform_1, window_bounds = array<i64: 1, 1, 9, 16>}, {transform_indices = @transform_2, window_bounds = array<i64: 8, 1, 16>}, {transform_indices = @transform_3, window_bounds = array<i64: 1, 1, 16>}, {pipeline_mode = #tpu.pipeline_mode<synchronous>, transform_indices = @transform_4, window_bounds = array<i64: 1, 9, 16>}, {pipeline_mode = #tpu.pipeline_mode<synchronous>, transform_indices = @transform_5, window_bounds = array<i64: 1, 16>}, {pipeline_mode = #tpu.pipeline_mode<synchronous>, transform_indices = @transform_6, window_bounds = array<i64: 1, 16>}, {pipeline_mode = #tpu.pipeline_mode<synchronous>, transform_indices = @transform_7, window_bounds = array<i64: 2, 32, 8>}, {transform_indices = @transform_8, window_bounds = array<i64: 1, 8, 8, 8>}, {transform_indices = @transform_9, window_bounds = array<i64: 1, 1, 8>}, {transform_indices = @transform_10, window_bounds = array<i64: 1, 1, 8>}]} {
    %c0 = arith.constant 0 : index
    %c0_0 = arith.constant 0 : index
    %0 = vector.load %arg7[%c0, %c0_0] : memref<1x16xf32, #tpu.memory_space<vmem>>, vector<1x16xf32>
    %c0_1 = arith.constant 0 : index
    %c0_2 = arith.constant 0 : index
    %1 = vector.load %arg8[%c0_1, %c0_2] : memref<1x16xf32, #tpu.memory_space<vmem>>, vector<1x16xf32>
    %c0_3 = arith.constant 0 : index
    %c0_4 = arith.constant 0 : index
    %c0_5 = arith.constant 0 : index
    %2 = vector.load %arg6[%c0_3, %c0_4, %c0_5] : memref<1x9x16xf32, #tpu.memory_space<vmem>>, vector<1x9x16xf32>
    %c0_6 = arith.constant 0 : index
    %c0_7 = arith.constant 0 : index
    %c0_8 = arith.constant 0 : index
    %c0_9 = arith.constant 0 : index
    %3 = vector.load %arg2[%c0_6, %c0_7, %c0_8, %c0_9] : memref<1x8x9x16xf32, #tpu.memory_space<vmem>>, vector<1x8x9x16xf32>
    %4 = vector.shape_cast %3 : vector<1x8x9x16xf32> to vector<8x9x16xf32>
    %c0_10 = arith.constant 0 : index
    %c0_11 = arith.constant 0 : index
    %c0_12 = arith.constant 0 : index
    %5 = vector.load %arg4[%c0_10, %c0_11, %c0_12] : memref<8x1x16xf32, #tpu.memory_space<vmem>>, vector<8x1x16xf32>
    %6 = vector.shape_cast %0 : vector<1x16xf32> to vector<1x1x16xf32>
    %7 = vector.broadcast %6 : vector<1x1x16xf32> to vector<8x9x16xf32>
    %8 = arith.mulf %4, %7 : vector<8x9x16xf32>
    %9 = vector.shape_cast %1 : vector<1x16xf32> to vector<1x1x16xf32>
    %10 = vector.broadcast %9 : vector<1x1x16xf32> to vector<8x9x16xf32>
    %11 = arith.addf %8, %10 : vector<8x9x16xf32>
    %cst = arith.constant 0.000000e+00 : f32
    %12 = vector.broadcast %cst : f32 to vector<8x9x16xf32>
    %13 = arith.cmpf oge, %11, %12 : vector<8x9x16xf32>
    %cst_13 = arith.constant 0.00999999977 : f32
    %14 = vector.broadcast %cst_13 : f32 to vector<8x9x16xf32>
    %15 = arith.mulf %14, %11 : vector<8x9x16xf32>
    %16 = arith.select %13, %11, %15 : vector<8x9x16xi1>, vector<8x9x16xf32>
    %17 = vector.broadcast %5 : vector<8x1x16xf32> to vector<8x9x16xf32>
    %18 = arith.mulf %16, %17 : vector<8x9x16xf32>
    %19 = vector.broadcast %2 : vector<1x9x16xf32> to vector<8x9x16xf32>
    %20 = arith.mulf %18, %19 : vector<8x9x16xf32>
    %c0_14 = arith.constant 0 : index
    %c0_15 = arith.constant 0 : index
    %c0_16 = arith.constant 0 : index
    %c0_17 = arith.constant 0 : index
    %21 = vector.load %arg3[%c0_14, %c0_15, %c0_16, %c0_17] : memref<1x1x9x16xf32, #tpu.memory_space<vmem>>, vector<1x1x9x16xf32>
    %22 = vector.shape_cast %21 : vector<1x1x9x16xf32> to vector<1x9x16xf32>
    %c0_18 = arith.constant 0 : index
    %c0_19 = arith.constant 0 : index
    %c0_20 = arith.constant 0 : index
    %23 = vector.load %arg5[%c0_18, %c0_19, %c0_20] : memref<1x1x16xf32, #tpu.memory_space<vmem>>, vector<1x1x16xf32>
    %24 = vector.shape_cast %0 : vector<1x16xf32> to vector<1x1x16xf32>
    %25 = vector.broadcast %24 : vector<1x1x16xf32> to vector<1x9x16xf32>
    %26 = arith.mulf %22, %25 : vector<1x9x16xf32>
    %27 = vector.shape_cast %1 : vector<1x16xf32> to vector<1x1x16xf32>
    %28 = vector.broadcast %27 : vector<1x1x16xf32> to vector<1x9x16xf32>
    %29 = arith.addf %26, %28 : vector<1x9x16xf32>
    %cst_21 = arith.constant 0.000000e+00 : f32
    %30 = vector.broadcast %cst_21 : f32 to vector<1x9x16xf32>
    %31 = arith.cmpf oge, %29, %30 : vector<1x9x16xf32>
    %cst_22 = arith.constant 0.00999999977 : f32
    %32 = vector.broadcast %cst_22 : f32 to vector<1x9x16xf32>
    %33 = arith.mulf %32, %29 : vector<1x9x16xf32>
    %34 = arith.select %31, %29, %33 : vector<1x9x16xi1>, vector<1x9x16xf32>
    %35 = vector.broadcast %23 : vector<1x1x16xf32> to vector<1x9x16xf32>
    %36 = arith.mulf %34, %35 : vector<1x9x16xf32>
    %37 = arith.mulf %36, %2 : vector<1x9x16xf32>
    %38 = tpu.concatenate %20, %37 in 0 : vector<8x9x16xf32>, vector<1x9x16xf32> -> vector<9x9x16xf32>
    %39 = vector.extract_strided_slice %38 {offsets = [0, 0, 0], sizes = [9, 8, 16], strides = [1, 1, 1]} : vector<9x9x16xf32> to vector<9x8x16xf32>
    %40 = vector.extract_strided_slice %38 {offsets = [0, 1, 0], sizes = [9, 8, 16], strides = [1, 1, 1]} : vector<9x9x16xf32> to vector<9x8x16xf32>
    %41 = tpu.concatenate %39, %40 in 2 : vector<9x8x16xf32>, vector<9x8x16xf32> -> vector<9x8x32xf32>
    %42 = arith.truncf %41 : vector<9x8x32xf32> to vector<9x8x32xbf16>
    %43 = vector.extract_strided_slice %42 {offsets = [0, 0, 0], sizes = [8, 8, 32], strides = [1, 1, 1]} : vector<9x8x32xbf16> to vector<8x8x32xbf16>
    %44 = vector.shape_cast %43 : vector<8x8x32xbf16> to vector<64x32xbf16>
    %c0_23 = arith.constant 0 : index
    %c0_24 = arith.constant 0 : index
    %c0_25 = arith.constant 0 : index
    %45 = vector.load %arg9[%c0_23, %c0_24, %c0_25] : memref<2x32x8xbf16, #tpu.memory_space<vmem>>, vector<1x32x8xbf16>
    %46 = vector.shape_cast %45 : vector<1x32x8xbf16> to vector<32x8xbf16>
    %cst_26 = arith.constant dense<0.000000e+00> : vector<64x8xf32>
    %47 = tpu.matmul %44, %46, %cst_26 {dimension_numbers = #tpu.dot_dimension_numbers<[1], [0], [0], [1], [0, 0, 1, 1], [], []>} : vector<64x32xbf16>, vector<32x8xbf16>, vector<64x8xf32> -> vector<64x8xf32>
    %48 = vector.extract_strided_slice %42 {offsets = [1, 0, 0], sizes = [8, 8, 32], strides = [1, 1, 1]} : vector<9x8x32xbf16> to vector<8x8x32xbf16>
    %49 = vector.shape_cast %48 : vector<8x8x32xbf16> to vector<64x32xbf16>
    %c1 = arith.constant 1 : index
    %c0_27 = arith.constant 0 : index
    %c0_28 = arith.constant 0 : index
    %50 = vector.load %arg9[%c1, %c0_27, %c0_28] : memref<2x32x8xbf16, #tpu.memory_space<vmem>>, vector<1x32x8xbf16>
    %51 = vector.shape_cast %50 : vector<1x32x8xbf16> to vector<32x8xbf16>
    %cst_29 = arith.constant dense<0.000000e+00> : vector<64x8xf32>
    %52 = tpu.matmul %49, %51, %cst_29 {dimension_numbers = #tpu.dot_dimension_numbers<[1], [0], [0], [1], [0, 0, 1, 1], [], []>} : vector<64x32xbf16>, vector<32x8xbf16>, vector<64x8xf32> -> vector<64x8xf32>
    %53 = arith.addf %47, %52 : vector<64x8xf32>
    %54 = vector.shape_cast %53 : vector<64x8xf32> to vector<8x8x8xf32>
    %55 = arith.truncf %54 : vector<8x8x8xf32> to vector<8x8x8xbf16>
    %c0_30 = arith.constant 0 : index
    %c0_31 = arith.constant 0 : index
    %c0_32 = arith.constant 0 : index
    %c0_33 = arith.constant 0 : index
    %56 = vector.load %arg10[%c0_30, %c0_31, %c0_32, %c0_33] : memref<1x8x8x8xbf16, #tpu.memory_space<vmem>>, vector<1x8x8x8xbf16>
    %57 = vector.shape_cast %56 : vector<1x8x8x8xbf16> to vector<8x8x8xbf16>
    %58 = vector.shape_cast %55 : vector<8x8x8xbf16> to vector<1x8x8x8xbf16>
    tpu.vector_store %arg10[%c0_30, %c0_31, %c0_32, %c0_33], %58 {strides = array<i32>} : memref<1x8x8x8xbf16, #tpu.memory_space<vmem>>, vector<1x8x8x8xbf16>,
    %c0_i32 = arith.constant 0 : i32
    %59 = arith.cmpi eq, %arg1, %c0_i32 : i32
    %60 = arith.extui %59 : i1 to i32
    %c0_i32_34 = arith.constant 0 : i32
    %61 = arith.cmpi ne, %60, %c0_i32_34 : i32
    scf.if %61 {
      %cst_49 = arith.constant 0.000000e+00 : f32
      %79 = vector.broadcast %cst_49 : f32 to vector<1x1x8xf32>
      %c0_50 = arith.constant 0 : index
      %c0_51 = arith.constant 0 : index
      %c0_52 = arith.constant 0 : index
      %80 = vector.load %arg11[%c0_50, %c0_51, %c0_52] : memref<1x1x8xf32, #tpu.memory_space<vmem>>, vector<1x1x8xf32>
      tpu.vector_store %arg11[%c0_50, %c0_51, %c0_52], %79 {strides = array<i32>} : memref<1x1x8xf32, #tpu.memory_space<vmem>>, vector<1x1x8xf32>,
      %cst_53 = arith.constant 0.000000e+00 : f32
      %81 = vector.broadcast %cst_53 : f32 to vector<1x1x8xf32>
      %c0_54 = arith.constant 0 : index
      %c0_55 = arith.constant 0 : index
      %c0_56 = arith.constant 0 : index
      %82 = vector.load %arg12[%c0_54, %c0_55, %c0_56] : memref<1x1x8xf32, #tpu.memory_space<vmem>>, vector<1x1x8xf32>
      tpu.vector_store %arg12[%c0_54, %c0_55, %c0_56], %81 {strides = array<i32>} : memref<1x1x8xf32, #tpu.memory_space<vmem>>, vector<1x1x8xf32>,
    } else {
    }
    %c0_35 = arith.constant 0 : index
    %c0_36 = arith.constant 0 : index
    %c0_37 = arith.constant 0 : index
    %62 = vector.load %arg11[%c0_35, %c0_36, %c0_37] : memref<1x1x8xf32, #tpu.memory_space<vmem>>, vector<1x1x8xf32>
    %63 = vector.shape_cast %62 : vector<1x1x8xf32> to vector<1x8xf32>
    %cst_38 = arith.constant dense<0.000000e+00> : vector<8xf32>
    %64 = vector.multi_reduction <add>, %53, %cst_38 [0] : vector<64x8xf32> to vector<8xf32>
    %65 = vector.shape_cast %64 : vector<8xf32> to vector<1x8xf32>
    %66 = arith.addf %63, %65 : vector<1x8xf32>
    %c0_39 = arith.constant 0 : index
    %c0_40 = arith.constant 0 : index
    %c0_41 = arith.constant 0 : index
    %67 = vector.load %arg11[%c0_39, %c0_40, %c0_41] : memref<1x1x8xf32, #tpu.memory_space<vmem>>, vector<1x1x8xf32>
    %68 = vector.shape_cast %67 : vector<1x1x8xf32> to vector<1x8xf32>
    %69 = vector.shape_cast %66 : vector<1x8xf32> to vector<1x1x8xf32>
    tpu.vector_store %arg11[%c0_39, %c0_40, %c0_41], %69 {strides = array<i32>} : memref<1x1x8xf32, #tpu.memory_space<vmem>>, vector<1x1x8xf32>,
    %c0_42 = arith.constant 0 : index
    %c0_43 = arith.constant 0 : index
    %c0_44 = arith.constant 0 : index
    %70 = vector.load %arg12[%c0_42, %c0_43, %c0_44] : memref<1x1x8xf32, #tpu.memory_space<vmem>>, vector<1x1x8xf32>
    %71 = vector.shape_cast %70 : vector<1x1x8xf32> to vector<1x8xf32>
    %72 = arith.mulf %53, %53 : vector<64x8xf32>
    %cst_45 = arith.constant dense<0.000000e+00> : vector<8xf32>
    %73 = vector.multi_reduction <add>, %72, %cst_45 [0] : vector<64x8xf32> to vector<8xf32>
    %74 = vector.shape_cast %73 : vector<8xf32> to vector<1x8xf32>
    %75 = arith.addf %71, %74 : vector<1x8xf32>
    %c0_46 = arith.constant 0 : index
    %c0_47 = arith.constant 0 : index
    %c0_48 = arith.constant 0 : index
    %76 = vector.load %arg12[%c0_46, %c0_47, %c0_48] : memref<1x1x8xf32, #tpu.memory_space<vmem>>, vector<1x1x8xf32>
    %77 = vector.shape_cast %76 : vector<1x1x8xf32> to vector<1x8xf32>
    %78 = vector.shape_cast %75 : vector<1x8xf32> to vector<1x1x8xf32>
    tpu.vector_store %arg12[%c0_46, %c0_47, %c0_48], %78 {strides = array<i32>} : memref<1x1x8xf32, #tpu.memory_space<vmem>>, vector<1x1x8xf32>,
    return
  }
  func.func @transform_0(%arg0: i32, %arg1: i32) -> (i32, i32, i32, i32) {
    %c0_i32 = arith.constant 0 : i32
    %c0_i32_0 = arith.constant 0 : i32
    %c0_i32_1 = arith.constant 0 : i32
    return %arg0, %arg1, %c0_i32, %c0_i32_0 : i32, i32, i32, i32
  }
  func.func @transform_1(%arg0: i32, %arg1: i32) -> (i32, i32, i32, i32) {
    %c8_i32 = arith.constant 8 : i32
    %0 = arith.muli %arg1, %c8_i32 : i32
    %c8_i32_0 = arith.constant 8 : i32
    %1 = arith.addi %0, %c8_i32_0 : i32
    %c0_i32 = arith.constant 0 : i32
    %c0_i32_1 = arith.constant 0 : i32
    %c0_i32_2 = arith.constant 0 : i32
    return %arg0, %1, %c0_i32, %c0_i32_1 : i32, i32, i32, i32
  }
  func.func @transform_2(%arg0: i32, %arg1: i32) -> (i32, i32, i32) {
    %c0_i32 = arith.constant 0 : i32
    %c0_i32_0 = arith.constant 0 : i32
    %c0_i32_1 = arith.constant 0 : i32
    return %arg1, %c0_i32, %c0_i32_0 : i32, i32, i32
  }
  func.func @transform_3(%arg0: i32, %arg1: i32) -> (i32, i32, i32) {
    %c8_i32 = arith.constant 8 : i32
    %0 = arith.muli %arg1, %c8_i32 : i32
    %c8_i32_0 = arith.constant 8 : i32
    %1 = arith.addi %0, %c8_i32_0 : i32
    %c0_i32 = arith.constant 0 : i32
    %c0_i32_1 = arith.constant 0 : i32
    %c0_i32_2 = arith.constant 0 : i32
    return %1, %c0_i32, %c0_i32_1 : i32, i32, i32
  }
  func.func @transform_4(%arg0: i32, %arg1: i32) -> (i32, i32, i32) {
    %c0_i32 = arith.constant 0 : i32
    %c0_i32_0 = arith.constant 0 : i32
    %c0_i32_1 = arith.constant 0 : i32
    %c0_i32_2 = arith.constant 0 : i32
    return %c0_i32, %c0_i32_0, %c0_i32_1 : i32, i32, i32
  }
  func.func @transform_5(%arg0: i32, %arg1: i32) -> (i32, i32) {
    %c0_i32 = arith.constant 0 : i32
    %c0_i32_0 = arith.constant 0 : i32
    %c0_i32_1 = arith.constant 0 : i32
    return %c0_i32, %c0_i32_0 : i32, i32
  }
  func.func @transform_6(%arg0: i32, %arg1: i32) -> (i32, i32) {
    %c0_i32 = arith.constant 0 : i32
    %c0_i32_0 = arith.constant 0 : i32
    %c0_i32_1 = arith.constant 0 : i32
    return %c0_i32, %c0_i32_0 : i32, i32
  }
  func.func @transform_7(%arg0: i32, %arg1: i32) -> (i32, i32, i32) {
    %c0_i32 = arith.constant 0 : i32
    %c0_i32_0 = arith.constant 0 : i32
    %c0_i32_1 = arith.constant 0 : i32
    %c0_i32_2 = arith.constant 0 : i32
    return %c0_i32, %c0_i32_0, %c0_i32_1 : i32, i32, i32
  }
  func.func @transform_8(%arg0: i32, %arg1: i32) -> (i32, i32, i32, i32) {
    %c0_i32 = arith.constant 0 : i32
    %c0_i32_0 = arith.constant 0 : i32
    %c0_i32_1 = arith.constant 0 : i32
    return %arg0, %arg1, %c0_i32, %c0_i32_0 : i32, i32, i32, i32
  }
  func.func @transform_9(%arg0: i32, %arg1: i32) -> (i32, i32, i32) {
    %c0_i32 = arith.constant 0 : i32
    %c0_i32_0 = arith.constant 0 : i32
    %c0_i32_1 = arith.constant 0 : i32
    return %arg0, %c0_i32, %c0_i32_0 : i32, i32, i32
  }
  func.func @transform_10(%arg0: i32, %arg1: i32) -> (i32, i32, i32) {
    %c0_i32 = arith.constant 0 : i32
    %c0_i32_0 = arith.constant 0 : i32
    %c0_i32_1 = arith.constant 0 : i32
    return %arg0, %c0_i32, %c0_i32_0 : i32, i32, i32
  }
}

</mosaic_0001>

<bundles_post_ra>
// kernel: tile.13
= control target key start
LH: loop header
LB: loop body
LE: loop exit
PB: predicated region body
PF: predicated region fallthrough
CT: control target
= control target key end

     0   :  { %s22_s0 = inlined_call_operand.vmem [shape: f32[4], index: 0, kind: input, shape index: {}]   ;;  %s23_s1 = inlined_call_operand.vmem [shape: f32[4,4], index: 1, kind: output, shape index: {}]  }
   0x1   :  { %v4_v0 = vld [vmem:[%s22_s0] ss:$0 sm:$0xff] }
   0x2   :  { %5 = vst [vmem:[%s23_s1] sm:$0xf] %v4_v0 }

// kernel: tile.14
= control target key start
LH: loop header
LB: loop body
LE: loop exit
PB: predicated region body
PF: predicated region fallthrough
CT: control target
= control target key end

     0   :  { %vm7_vm0 = vcmask 31744   ;;  %s37_s8 = smov 4   ;;  %s38_s9 = smov 8   ;;  %vm13_vm1 = vcmask 130144   ;;  %vm19_vm2 = vcmask 97344   ;;  %vm25_vm3 = vcmask 64544   ;;  %s55_s0 = inlined_call_operand.vmem [shape: f32[4,4], index: 0, kind: input, shape index: {}]   ;;  %s56_s1 = inlined_call_operand.vmem [shape: f32[1,16], index: 1, kind: output, shape index: {}]  }
   0x1   :  { %v4_v0 = vld [vmem:[%s55_s0] sm:$0xf]  ;;  %s36_s0 = smov 12  }
   0x2   :  { %5 = vst [vmem:[#allocation1] sm:$0xf] %v4_v0 }
   0x9   :  { %v10_v1 = vld [vmem:[#allocation1 + $0x3] sm:$0x1]   ;;  %v22_v2 = vld [vmem:[#allocation1 + $0x1] sm:$0x1]   ;;  %v6_v3 = vld [vmem:[#allocation1] sm:$0x1]  }
   0xa   :  { %11 = vrot.lane.b32.xlu0 %v10_v1, %s36_s0  ;;  %23 = vrot.lane.b32.xlu1 %v22_v2, %s37_s8  ;;  %v16_v4 = vld [vmem:[#allocation1 + $0x2] sm:$0x1]   ;;  %8 = vst.msk [vmem:[#allocation0] sm:$0x1] %vm7_vm0, %v6_v3  }
   0xe   :  { %17 = vrot.lane.b32.xlu0 %v16_v4, %s38_s9 }
  0x7c   :  { %v12_v5 = vpop.permute.xlu0 %11   ;;  %v24_v6 = vpop.permute.xlu1 %23  }
  0x7d   :  { %14 = vst.msk [vmem:[#allocation0] sm:$0x1] %vm13_vm1, %v12_v5  }
  0x80   :  { %v18_v7 = vpop.permute.xlu0 %17  }
  0x81   :  { %20 = vst.msk [vmem:[#allocation0] sm:$0x1] %vm19_vm2, %v18_v7  }
  0x82   :  { %26 = vst.msk [vmem:[#allocation0] sm:$0x1] %vm25_vm3, %v24_v6  }
  0x89   :  { %v30_v8 = vld [vmem:[#allocation0] sm:$0x1] }
  0x8a   :  { %32 = vst [vmem:[%s56_s1] sm:$0x1] %v30_v8 }

// kernel: encoder_block_forward.3
= control target key start
LH: loop header
LB: loop body
LE: loop exit
PB: predicated region body
PF: predicated region fallthrough
CT: control target
= control target key end

     0   :  { %vm74_vm0 = vcmask 31744   ;;  %vm208_vm1 = vcmask 24576   ;;  %s1291_s0 = inlined_call_operand.vmem [shape: f32[512,4], index: 0, kind: input, shape index: {}]   ;;  %s1292_s1 = inlined_call_operand.vmem [shape: f32[1,1,4], index: 1, kind: output, shape index: {0}]   ;;  %s1293_s2 = inlined_call_operand.vmem [shape: f32[1,1,4], index: 2, kind: output, shape index: {1}]  }
   0x1   :  { %v434_v0 = vld [vmem:[%s1291_s0] sm:$0xff]  ;;  %v439_v1 = vld [vmem:[%s1291_s0 + $0x8] sm:$0xff]  ;;  %v444_v2 = vld [vmem:[%s1291_s0 + $0x10] sm:$0xff] }
   0x2   :  { %v75_v3 = vsel %vm74_vm0, %v434_v0, 0.0  ;;  %v76_v4 = vsel %vm74_vm0, %v439_v1, 0.0  ;;  %v78_v5 = vsel %vm74_vm0, %v444_v2, 0.0  ;;  %v455_v6 = vld [vmem:[%s1291_s0 + $0x18] sm:$0xff]  ;;  %v462_v9 = vld [vmem:[%s1291_s0 + $0x20] sm:$0xff]  ;;  %v469_v12 = vld [vmem:[%s1291_s0 + $0x28] sm:$0xff] }
   0x3   :  { %v77_v7 = vadd.f32 %v76_v4, %v75_v3  ;;  %v80_v8 = vsel %vm74_vm0, %v455_v6, 0.0  ;;  %v82_v11 = vsel %vm74_vm0, %v462_v9, 0.0  ;;  %v84_v14 = vsel %vm74_vm0, %v469_v12, 0.0  ;;  %v476_v15 = vld [vmem:[%s1291_s0 + $0x30] sm:$0xff]  ;;  %v481_v17 = vld [vmem:[%s1291_s0 + $0x38] sm:$0xff]  ;;  %v486_v18 = vld [vmem:[%s1291_s0 + $0x40] sm:$0xff] }
   0x4   :  { %v86_v19 = vsel %vm74_vm0, %v476_v15, 0.0  ;;  %v493_v20 = vld [vmem:[%s1291_s0 + $0x48] sm:$0xff]  ;;  %v498_v21 = vld [vmem:[%s1291_s0 + $0x50] sm:$0xff]  ;;  %v503_v22 = vld [vmem:[%s1291_s0 + $0x58] sm:$0xff]  ;;  %v88_v24 = vsel %vm74_vm0, %v481_v17, 0.0  ;;  %v90_v25 = vsel %vm74_vm0, %v486_v18, 0.0 }
   0x5   :  { %v79_v10 = vadd.f32 %v78_v5, %v77_v7  ;;  %v512_v26 = vld [vmem:[%s1291_s0 + $0x108] sm:$0xff]  ;;  %v517_v27 = vld [vmem:[%s1291_s0 + $0x110] sm:$0xff]  ;;  %v522_v28 = vld [vmem:[%s1291_s0 + $0x118] sm:$0xff]  ;;  %v92_v29 = vsel %vm74_vm0, %v493_v20, 0.0  ;;  %v94_v30 = vsel %vm74_vm0, %v498_v21, 0.0  ;;  %v530_v31 = vsel %vm74_vm0, %v503_v22, 0.0 }
   0x6   :  { %v535_v32 = vld [vmem:[%s1291_s0 + $0x120] sm:$0xff]  ;;  %v540_v33 = vld [vmem:[%s1291_s0 + $0x128] sm:$0xff]  ;;  %v545_v34 = vld [vmem:[%s1291_s0 + $0x130] sm:$0xff]  ;;  %v549_v36 = vsel %vm74_vm0, %v512_v26, 0.0  ;;  %v553_v37 = vsel %vm74_vm0, %v517_v27, 0.0  ;;  %v557_v38 = vsel %vm74_vm0, %v522_v28, 0.0 }
   0x7   :  { %v81_v13 = vadd.f32 %v80_v8, %v79_v10  ;;  %1312 = vst [vmem:[#allocation2_spill] sm:$0xff] %v549_v36  ;;  %1313 = vst [vmem:[#allocation3_spill] sm:$0xff] %v553_v37  ;;  %v562_v39 = vld [vmem:[%s1291_s0 + $0x138] sm:$0xff]  ;;  %v567_v40 = vld [vmem:[%s1291_s0 + $0x140] sm:$0xff]  ;;  %v576_v42 = vsel %vm74_vm0, %v535_v32, 0.0  ;;  %v580_v43 = vsel %vm74_vm0, %v540_v33, 0.0 }
   0x8   :  { %1314 = vst [vmem:[#allocation4_spill] sm:$0xff] %v557_v38  ;;  %v572_v41 = vld [vmem:[%s1291_s0 + $0x148] sm:$0xff]  ;;  %1315 = vst [vmem:[#allocation5_spill] sm:$0xff] %v576_v42  ;;  %v584_v44 = vsel %vm74_vm0, %v545_v34, 0.0  ;;  %v589_v45 = vld [vmem:[%s1291_s0 + $0x150] sm:$0xff]  ;;  %v603_v49 = vsel %vm74_vm0, %v562_v39, 0.0 }
   0x9   :  { %v83_v16 = vadd.f32 %v82_v11, %v81_v13  ;;  %1316 = vst [vmem:[#allocation6_spill] sm:$0xff] %v580_v43  ;;  %1317 = vst [vmem:[#allocation7_spill] sm:$0xff] %v584_v44  ;;  %v594_v46 = vld [vmem:[%s1291_s0 + $0x158] sm:$0xff]  ;;  %v599_v47 = vld [vmem:[%s1291_s0 + $0x160] sm:$0xff]  ;;  %v607_v50 = vsel %vm74_vm0, %v567_v40, 0.0  ;;  %v611_v51 = vsel %vm74_vm0, %v572_v41, 0.0  ;;  %v212_v44 = vmul.f32 %v444_v2, %v444_v2 }
   0xa   :  { %1318 = vst [vmem:[#allocation8_spill] sm:$0xff] %v603_v49  ;;  %1319 = vst [vmem:[#allocation9_spill] sm:$0xff] %v607_v50  ;;  %v616_v52 = vld [vmem:[%s1291_s0 + $0x168] sm:$0xff]  ;;  %v621_v53 = vld [vmem:[%s1291_s0 + $0x170] sm:$0xff]  ;;  %v630_v55 = vsel %vm74_vm0, %v589_v45, 0.0  ;;  %v634_v56 = vsel %vm74_vm0, %v594_v46, 0.0 }
   0xb   :  { %v85_v23 = vadd.f32 %v84_v14, %v83_v16  ;;  %1320 = vst [vmem:[#allocation10_spill] sm:$0xff] %v611_v51  ;;  %v626_v54 = vld [vmem:[%s1291_s0 + $0x178] sm:$0xff]  ;;  %1321 = vst [vmem:[#allocation11_spill] sm:$0xff] %v630_v55  ;;  %v638_v57 = vsel %vm74_vm0, %v599_v47, 0.0  ;;  %v643_v58 = vld [vmem:[%s1291_s0 + $0x180] sm:$0xff]  ;;  %v657_v62 = vsel %vm74_vm0, %v616_v52, 0.0 }
   0xc   :  { %1322 = vst [vmem:[#allocation12_spill] sm:$0xff] %v634_v56  ;;  %1323 = vst [vmem:[#allocation13_spill] sm:$0xff] %v638_v57  ;;  %v648_v59 = vld [vmem:[%s1291_s0 + $0x188] sm:$0xff]  ;;  %v653_v60 = vld [vmem:[%s1291_s0 + $0x190] sm:$0xff]  ;;  %v661_v63 = vsel %vm74_vm0, %v621_v53, 0.0  ;;  %v665_v3 = vsel %vm74_vm0, %v626_v54, 0.0 }
   0xd   :  { %v87_v35 = vadd.f32 %v86_v19, %v85_v23  ;;  %1324 = vst [vmem:[#allocation14_spill] sm:$0xff] %v657_v62  ;;  %1325 = vst [vmem:[#allocation15_spill] sm:$0xff] %v661_v63  ;;  %v670_v4 = vld [vmem:[%s1291_s0 + $0x198] sm:$0xff]  ;;  %v675_v5 = vld [vmem:[%s1291_s0 + $0x1a0] sm:$0xff]  ;;  %v684_v8 = vsel %vm74_vm0, %v643_v58, 0.0  ;;  %v688_v10 = vsel %vm74_vm0, %v648_v59, 0.0 }
   0xe   :  { %1326 = vst [vmem:[#allocation16_spill] sm:$0xff] %v665_v3  ;;  %v680_v7 = vld [vmem:[%s1291_s0 + $0x1a8] sm:$0xff]  ;;  %1327 = vst [vmem:[#allocation17_spill] sm:$0xff] %v684_v8  ;;  %v692_v11 = vsel %vm74_vm0, %v653_v60, 0.0  ;;  %v697_v13 = vld [vmem:[%s1291_s0 + $0x60] sm:$0xff] }
   0xf   :  { %v89_v48 = vadd.f32 %v88_v24, %v87_v35  ;;  %1328 = vst [vmem:[#allocation18_spill] sm:$0xff] %v688_v10  ;;  %1329 = vst [vmem:[#allocation19_spill] sm:$0xff] %v692_v11  ;;  %v702_v14 = vld [vmem:[%s1291_s0 + $0x1b0] sm:$0xff]  ;;  %v707_v16 = vld [vmem:[%s1291_s0 + $0x1b8] sm:$0xff]  ;;  %v716_v24 = vsel %vm74_vm0, %v670_v4, 0.0  ;;  %v724_v35 = vsel %vm74_vm0, %v680_v7, 0.0 }
  0x10   :  { %v712_v19 = vld [vmem:[%s1291_s0 + $0x1c0] sm:$0xff]  ;;  %1330 = vst [vmem:[#allocation20_spill] sm:$0xff] %v716_v24  ;;  %1332 = vst [vmem:[#allocation22_spill] sm:$0xff] %v724_v35  ;;  %v747_v35 = vsel %vm74_vm0, %v707_v16, 0.0  ;;  %v761_v10 = vld [vmem:[%s1291_s0 + $0x1e8] sm:$0xff] }
  0x11   :  { %v91_v61 = vadd.f32 %v90_v25, %v89_v48  ;;  %v720_v25 = vsel %vm74_vm0, %v675_v5, 0.0  ;;  %v729_v48 = vld [vmem:[%s1291_s0 + $0x1c8] sm:$0xff]  ;;  %1334 = vst [vmem:[#allocation24_spill] sm:$0xff] %v747_v35  ;;  %v751_v24 = vsel %vm74_vm0, %v712_v19, 0.0  ;;  %v756_v11 = vld [vmem:[%s1291_s0 + $0x1e0] sm:$0xff]  ;;  %v783_v63 = vld [vmem:[%s1291_s0 + $0x1f8] sm:$0xff] }
  0x12   :  { %1331 = vst [vmem:[#allocation21_spill] sm:$0xff] %v720_v25  ;;  %v743_v25 = vsel %vm74_vm0, %v702_v14, 0.0  ;;  %1335 = vst [vmem:[#allocation25_spill] sm:$0xff] %v751_v24  ;;  %v770_v8 = vsel %vm74_vm0, %v729_v48, 0.0  ;;  %v805_v57 = vsel %vm74_vm0, %v783_v63, 0.0  ;;  %v837_v55 = vld [vmem:[%s1291_s0 + $0x98] sm:$0xff] }
  0x13   :  { %v93_v23 = vadd.f32 %v92_v29, %v91_v61  ;;  %v734_v29 = vld [vmem:[%s1291_s0 + $0x1d0] sm:$0xff]  ;;  %v739_v61 = vld [vmem:[%s1291_s0 + $0x1d8] sm:$0xff]  ;;  %1333 = vst [vmem:[#allocation23_spill] sm:$0xff] %v743_v25  ;;  %1337 = vst [vmem:[#allocation27_spill] sm:$0xff] %v770_v8  ;;  %v793_v8 = vsel %vm74_vm0, %v761_v10, 0.0  ;;  %v112_v2 = vsel %vm74_vm0, %v837_v55, 0.0 }
  0x14   :  { %v766_v25 = vld [vmem:[%s1291_s0 + $0x1f0] sm:$0xff]  ;;  %v774_v24 = vsel %vm74_vm0, %v734_v29, 0.0  ;;  %v778_v3 = vsel %vm74_vm0, %v739_v61, 0.0  ;;  %1340 = vst [vmem:[#allocation30_spill] sm:$0xff] %v783_v63  ;;  %1342 = vst [vmem:[#allocation32_spill] sm:$0xff] %v793_v8  ;;  %v842_v51 = vld [vmem:[%s1291_s0 + $0xa0] sm:$0xff] }
  0x15   :  { %1336 = vst [vmem:[#allocation26_spill] sm:$0xff] %v766_v25  ;;  %v95_v35 = vadd.f32 %v94_v30, %v93_v23  ;;  %1338 = vst [vmem:[#allocation28_spill] sm:$0xff] %v774_v24  ;;  %v98_v30 = vsel %vm74_vm0, %v697_v13, 0.0  ;;  %v789_v23 = vsel %vm74_vm0, %v756_v11, 0.0  ;;  %v797_v24 = vsel %vm74_vm0, %v766_v25, 0.0  ;;  %v24_v8 = vld [vmem:[%s1291_s0 + $0x70] sm:$0xff] }
  0x16   :  { %1339 = vst [vmem:[#allocation29_spill] sm:$0xff] %v778_v3  ;;  %1341 = vst [vmem:[#allocation31_spill] sm:$0xff] %v789_v23  ;;  %v23_v3 = vld [vmem:[%s1291_s0 + $0x68] sm:$0xff]  ;;  %v858_v42 = vld [vmem:[%s1291_s0 + $0xb0] sm:$0xff] }
  0x17   :  { %1343 = vst [vmem:[#allocation33_spill] sm:$0xff] %v797_v24  ;;  %v97_v62 = vadd.f32 %v530_v31, %v95_v35  ;;  %1344 = vst [vmem:[#allocation34_spill] sm:$0xff] %v805_v57  ;;  %v100_v23 = vsel %vm74_vm0, %v23_v3, 0.0  ;;  %v814_v24 = vld [vmem:[%s1291_s0 + $0x78] sm:$0xff]  ;;  %v819_v31 = vld [vmem:[%s1291_s0 + $0x80] sm:$0xff]  ;;  %v102_v57 = vsel %vm74_vm0, %v24_v8, 0.0 }
  0x18   :  { %1345 = vst [vmem:[#allocation35_spill] sm:$0xff] %v814_v24  ;;  %1346 = vst [vmem:[#allocation36_spill] sm:$0xff] %v819_v31  ;;  %v824_v35 = vld [vmem:[%s1291_s0 + $0x88] sm:$0xff]  ;;  %v104_v49 = vsel %vm74_vm0, %v814_v24, 0.0  ;;  %v871_v38 = vld [vmem:[%s1291_s0 + $0xb8] sm:$0xff] }
  0x19   :  { %v99_v56 = vadd.f32 %v98_v30, %v97_v62  ;;  %1347 = vst [vmem:[#allocation37_spill] sm:$0xff] %v824_v35  ;;  %v210_v62 = vmul.f32 %v434_v0, %v434_v0  ;;  %v832_v30 = vld [vmem:[%s1291_s0 + $0x90] sm:$0xff]  ;;  %1349 = vst [vmem:[#allocation39_spill] sm:$0xff] %v837_v55  ;;  %v211_v0 = vmul.f32 %v439_v1, %v439_v1  ;;  %v853_v43 = vld [vmem:[%s1291_s0 + $0xa8] sm:$0xff] }
  0x1a   :  { %1348 = vst [vmem:[#allocation38_spill] sm:$0xff] %v832_v30  ;;  %1350 = vst [vmem:[#allocation40_spill] sm:$0xff] %v842_v51  ;;  %v110_v1 = vsel %vm74_vm0, %v832_v30, 0.0  ;;  %v876_v37 = vld [vmem:[%s1291_s0 + $0xc0] sm:$0xff]  ;;  %v881_v36 = vld [vmem:[%s1291_s0 + $0xc8] sm:$0xff]  ;;  %v114_v30 = vsel %vm74_vm0, %v842_v51, 0.0 }
  0x1b   :  { %v101_v50 = vadd.f32 %v100_v23, %v99_v56  ;;  %1351 = vst [vmem:[#allocation41_spill] sm:$0xff] %v853_v43  ;;  %1352 = vst [vmem:[#allocation42_spill] sm:$0xff] %v858_v42  ;;  %v106_v56 = vsel %vm74_vm0, %v819_v31, 0.0  ;;  %v108_v23 = vsel %vm74_vm0, %v824_v35, 0.0  ;;  %v116_v55 = vsel %vm74_vm0, %v853_v43, 0.0  ;;  %v892_v24 = vld [vmem:[%s1291_s0 + $0xd0] sm:$0xff] }
  0x1c   :  { %1353 = vst [vmem:[#allocation43_spill] sm:$0xff] %v871_v38  ;;  %1354 = vst [vmem:[#allocation44_spill] sm:$0xff] %v876_v37  ;;  %v213_v31 = vmul.f32 %v455_v6, %v455_v6  ;;  %v897_v63 = vld [vmem:[%s1291_s0 + $0xd8] sm:$0xff]  ;;  %v909_v6 = vsel %vm74_vm0, %v876_v37, 0.0  ;;  %v913_v43 = vsel %vm74_vm0, %v881_v36, 0.0  ;;  %v918_v51 = vld [vmem:[%s1291_s0 + $0xe0] sm:$0xff] }
  0x1d   :  { %1355 = vst [vmem:[#allocation45_spill] sm:$0xff] %v881_v36  ;;  %v103_v35 = vadd.f32 %v102_v57, %v101_v50  ;;  %1356 = vst [vmem:[#allocation46_spill] sm:$0xff] %v892_v24  ;;  %v901_v50 = vsel %vm74_vm0, %v858_v42, 0.0  ;;  %v905_v57 = vsel %vm74_vm0, %v871_v38, 0.0  ;;  %v923_v42 = vld [vmem:[%s1291_s0 + $0xe8] sm:$0xff]  ;;  %v928_v38 = vld [vmem:[%s1291_s0 + $0xf0] sm:$0xff] }
  0x1e   :  { %1357 = vst [vmem:[#allocation47_spill] sm:$0xff] %v897_v63  ;;  %1358 = vst [vmem:[#allocation48_spill] sm:$0xff] %v905_v57  ;;  %v932_v36 = vsel %vm74_vm0, %v892_v24, 0.0  ;;  %v942_v57 = vsel %vm74_vm0, %v918_v51, 0.0  ;;  %v946_v25 = vsel %vm74_vm0, %v923_v42, 0.0  ;;  %v216_v24 = vmul.f32 %v476_v15, %v476_v15 }
  0x1f   :  { %1359 = vst [vmem:[#allocation49_spill] sm:$0xff] %v909_v6  ;;  %1360 = vst [vmem:[#allocation50_spill] sm:$0xff] %v913_v43  ;;  %v105_v37 = vadd.f32 %v104_v49, %v103_v35  ;;  %v936_v43 = vsel %vm74_vm0, %v897_v63, 0.0  ;;  %v214_v6 = vmul.f32 %v462_v9, %v462_v9  ;;  %v950_v49 = vsel %vm74_vm0, %v928_v38, 0.0 }
  0x20   :  { %1361 = vst [vmem:[#allocation51_spill] sm:$0xff] %v918_v51  ;;  %1362 = vst [vmem:[#allocation52_spill] sm:$0xff] %v923_v42  ;;  %v215_v35 = vmul.f32 %v469_v12, %v469_v12  ;;  %v217_v9 = vmul.f32 %v481_v17, %v481_v17  ;;  %v218_v51 = vmul.f32 %v486_v18, %v486_v18 }
  0x21   :  { %1363 = vst [vmem:[#allocation53_spill] sm:$0xff] %v928_v38  ;;  %1364 = vst [vmem:[#allocation54_spill] sm:$0xff] %v950_v49  ;;  %v107_v63 = vadd.f32 %v106_v56, %v105_v37  ;;  %v219_v42 = vmul.f32 %v493_v20, %v493_v20  ;;  %v220_v38 = vmul.f32 %v498_v21, %v498_v21 }
  0x22   :  { %v221_v49 = vmul.f32 %v503_v22, %v503_v22  ;;  %v222_v12 = vmul.f32 %v697_v13, %v697_v13  ;;  %v968_v15 = vmul.f32 %v23_v3, %v23_v3  ;;  %v970_v56 = vmul.f32 %v24_v8, %v24_v8 }
  0x23   :  { %v109_v37 = vadd.f32 %v108_v23, %v107_v63  ;;  %v243_v17 = vmul.f32 %v512_v26, %v512_v26  ;;  %v244_v18 = vmul.f32 %v517_v27, %v517_v27  ;;  %v245_v20 = vmul.f32 %v522_v28, %v522_v28 }
  0x24   :  { %v246_v21 = vmul.f32 %v535_v32, %v535_v32  ;;  %v247_v22 = vmul.f32 %v540_v33, %v540_v33  ;;  %v248_v3 = vmul.f32 %v545_v34, %v545_v34  ;;  %v249_v8 = vmul.f32 %v562_v39, %v562_v39 }
  0x25   :  { %v111_v63 = vadd.f32 %v110_v1, %v109_v37  ;;  %v250_v26 = vmul.f32 %v567_v40, %v567_v40  ;;  %v251_v27 = vmul.f32 %v572_v41, %v572_v41  ;;  %v252_v28 = vmul.f32 %v589_v45, %v589_v45  ;;  %v1365_v37 = vld [vmem:[#allocation26_spill] sm:$0xff] }
  0x26   :  { %v253_v32 = vmul.f32 %v594_v46, %v594_v46  ;;  %v274_v33 = vsel %vm74_vm0, %v210_v62, 0.0  ;;  %v254_v34 = vmul.f32 %v599_v47, %v599_v47  ;;  %v275_v39 = vsel %vm74_vm0, %v211_v0, 0.0 }
  0x27   :  { %v113_v13 = vadd.f32 %v112_v2, %v111_v63  ;;  %v277_v23 = vsel %vm74_vm0, %v212_v44, 0.0  ;;  %v255_v40 = vmul.f32 %v616_v52, %v616_v52  ;;  %v256_v41 = vmul.f32 %v621_v53, %v621_v53 }
  0x28   :  { %v257_v45 = vmul.f32 %v626_v54, %v626_v54  ;;  %v276_v46 = vadd.f32 %v275_v39, %v274_v33  ;;  %v258_v62 = vmul.f32 %v643_v58, %v643_v58  ;;  %v259_v47 = vmul.f32 %v648_v59, %v648_v59  ;;  %v1366_v33 = vld [vmem:[#allocation48_spill] sm:$0xff] }
  0x29   :  { %v115_v1 = vadd.f32 %v114_v30, %v113_v13  ;;  %v279_v0 = vsel %vm74_vm0, %v213_v31, 0.0  ;;  %v260_v44 = vmul.f32 %v653_v60, %v653_v60  ;;  %v261_v52 = vmul.f32 %v670_v4, %v670_v4  ;;  %v1367_v13 = vld [vmem:[#allocation30_spill] sm:$0xff] }
  0x2a   :  { %v262_v53 = vmul.f32 %v675_v5, %v675_v5  ;;  %v278_v54 = vadd.f32 %v277_v23, %v276_v46  ;;  %v263_v30 = vmul.f32 %v680_v7, %v680_v7  ;;  %v264_v58 = vmul.f32 %v702_v14, %v702_v14  ;;  %v1368_v46 = vld [vmem:[#allocation49_spill] sm:$0xff] }
  0x2b   :  { %v117_v2 = vadd.f32 %v116_v55, %v115_v1  ;;  %v281_v59 = vsel %vm74_vm0, %v214_v6, 0.0  ;;  %v265_v31 = vmul.f32 %v707_v16, %v707_v16  ;;  %v266_v60 = vmul.f32 %v712_v19, %v712_v19 }
  0x2c   :  { %v267_v4 = vmul.f32 %v729_v48, %v729_v48  ;;  %v280_v5 = vadd.f32 %v279_v0, %v278_v54  ;;  %v268_v7 = vmul.f32 %v734_v29, %v734_v29  ;;  %v269_v14 = vmul.f32 %v739_v61, %v739_v61 }
  0x2d   :  { %v119_v55 = vadd.f32 %v901_v50, %v117_v2  ;;  %v283_v6 = vsel %vm74_vm0, %v215_v35, 0.0  ;;  %v270_v16 = vmul.f32 %v756_v11, %v756_v11  ;;  %v271_v19 = vmul.f32 %v761_v10, %v761_v10 }
  0x2e   :  { %v272_v48 = vmul.f32 %v1365_v37, %v1365_v37  ;;  %v282_v63 = vadd.f32 %v281_v59, %v280_v5  ;;  %v273_v29 = vmul.f32 %v1367_v13, %v1367_v13  ;;  %v285_v39 = vsel %vm74_vm0, %v216_v24, 0.0  ;;  %v1371_v13 = vld [vmem:[#allocation35_spill] sm:$0xff] }
  0x2f   :  { %v121_v50 = vadd.f32 %v1366_v33, %v119_v55  ;;  %v287_v61 = vsel %vm74_vm0, %v217_v9, 0.0  ;;  %v289_v23 = vsel %vm74_vm0, %v218_v51, 0.0  ;;  %v291_v11 = vsel %vm74_vm0, %v219_v42, 0.0  ;;  %v1158_v33 = vld [vmem:[%s1291_s0 + $0x100] sm:$0xff] }
  0x30   :  { %v284_v35 = vadd.f32 %v283_v6, %v282_v63  ;;  %v293_v10 = vsel %vm74_vm0, %v220_v38, 0.0  ;;  %v295_v0 = vsel %vm74_vm0, %v221_v49, 0.0  ;;  %v297_v54 = vsel %vm74_vm0, %v222_v12, 0.0  ;;  %v1369_v38 = vld [vmem:[#allocation50_spill] sm:$0xff] }
  0x31   :  { %v123_v1 = vadd.f32 %v1368_v46, %v121_v50  ;;  %v1051_v2 = vsel %vm74_vm0, %v243_v17, 0.0  ;;  %v1054_v24 = vsel %vm74_vm0, %v244_v18, 0.0  ;;  %v1057_v9 = vsel %vm74_vm0, %v245_v20, 0.0  ;;  %v1370_v50 = vld [vmem:[#allocation54_spill] sm:$0xff] }
  0x32   :  { %v286_v59 = vadd.f32 %v285_v39, %v284_v35  ;;  %v1060_v42 = vsel %vm74_vm0, %v246_v21, 0.0  ;;  %v1064_v5 = vsel %vm74_vm0, %v247_v22, 0.0  ;;  %v1067_v49 = vsel %vm74_vm0, %v248_v3, 0.0  ;;  %v1372_v35 = vld [vmem:[#allocation36_spill] sm:$0xff] }
  0x33   :  { %v125_v51 = vadd.f32 %v1369_v38, %v123_v1  ;;  %v1070_v12 = vsel %vm74_vm0, %v249_v8, 0.0  ;;  %v1073_v18 = vsel %vm74_vm0, %v250_v26, 0.0  ;;  %v1076_v20 = vsel %vm74_vm0, %v251_v27, 0.0  ;;  %v1373_v1 = vld [vmem:[#allocation37_spill] sm:$0xff] }
  0x34   :  { %v288_v17 = vadd.f32 %v287_v61, %v286_v59  ;;  %v1079_v21 = vsel %vm74_vm0, %v252_v28, 0.0  ;;  %v1083_v22 = vsel %vm74_vm0, %v253_v32, 0.0  ;;  %v1086_v3 = vsel %vm74_vm0, %v254_v34, 0.0 }
  0x35   :  { %v127_v55 = vadd.f32 %v932_v36, %v125_v51  ;;  %v1089_v8 = vsel %vm74_vm0, %v255_v40, 0.0  ;;  %v1092_v26 = vsel %vm74_vm0, %v256_v41, 0.0  ;;  %v1095_v27 = vsel %vm74_vm0, %v257_v45, 0.0 }
  0x36   :  { %v290_v6 = vadd.f32 %v289_v23, %v288_v17  ;;  %v1098_v28 = vsel %vm74_vm0, %v258_v62, 0.0  ;;  %v1102_v32 = vsel %vm74_vm0, %v259_v47, 0.0  ;;  %v1105_v34 = vsel %vm74_vm0, %v260_v44, 0.0  ;;  %v1375_v17 = vld [vmem:[#allocation38_spill] sm:$0xff] }
  0x37   :  { %v129_v36 = vadd.f32 %v936_v43, %v127_v55  ;;  %v1108_v40 = vsel %vm74_vm0, %v261_v52, 0.0  ;;  %v1111_v41 = vsel %vm74_vm0, %v262_v53, 0.0  ;;  %v1114_v45 = vsel %vm74_vm0, %v263_v30, 0.0 }
  0x38   :  { %v292_v37 = vadd.f32 %v291_v11, %v290_v6  ;;  %v1117_v62 = vsel %vm74_vm0, %v264_v58, 0.0  ;;  %v1121_v47 = vsel %vm74_vm0, %v265_v31, 0.0  ;;  %v1124_v44 = vsel %vm74_vm0, %v266_v60, 0.0 }
  0x39   :  { %v131_v43 = vadd.f32 %v942_v57, %v129_v36  ;;  %v1127_v52 = vsel %vm74_vm0, %v267_v4, 0.0  ;;  %v1130_v53 = vsel %vm74_vm0, %v268_v7, 0.0  ;;  %v1133_v30 = vsel %vm74_vm0, %v269_v14, 0.0  ;;  %v1141_v57 = vld [vmem:[%s1291_s0 + $0xf8] sm:$0xff]  ;;  %v1376_v36 = vld [vmem:[#allocation3_spill] sm:$0xff] }
  0x3a   :  { %v294_v63 = vadd.f32 %v293_v10, %v292_v37  ;;  %v1136_v58 = vsel %vm74_vm0, %v270_v16, 0.0  ;;  %v1145_v60 = vsel %vm74_vm0, %v271_v19, 0.0  ;;  %v1148_v4 = vsel %vm74_vm0, %v272_v48, 0.0 }
  0x3b   :  { %v133_v31 = vadd.f32 %v946_v25, %v131_v43  ;;  %v1151_v7 = vsel %vm74_vm0, %v273_v29, 0.0  ;;  %v136_v14 = vsel %vm74_vm0, %v1141_v57, 0.0  ;;  %v225_v19 = vmul.f32 %v1371_v13, %v1371_v13  ;;  %v1377_v43 = vld [vmem:[#allocation39_spill] sm:$0xff] }
  0x3c   :  { %v296_v16 = vadd.f32 %v295_v0, %v294_v63  ;;  %v299_v48 = vsel %vm74_vm0, %v968_v15, 0.0  ;;  %v138_v29 = vsel %vm74_vm0, %v1158_v33, 0.0  ;;  %v226_v23 = vmul.f32 %v1372_v35, %v1372_v35  ;;  %v1374_v15 = vld [vmem:[#allocation2_spill] sm:$0xff] }
  0x3d   :  { %v135_v25 = vadd.f32 %v1370_v50, %v133_v31  ;;  %v301_v11 = vsel %vm74_vm0, %v970_v56, 0.0  ;;  %v227_v0 = vmul.f32 %v1373_v1, %v1373_v1  ;;  %v303_v59 = vsel %vm74_vm0, %v225_v19, 0.0  ;;  %v1379_v50 = vld [vmem:[#allocation40_spill] sm:$0xff] }
  0x3e   :  { %v298_v39 = vadd.f32 %v297_v54, %v296_v16  ;;  %v228_v54 = vmul.f32 %v1375_v17, %v1375_v17  ;;  %v305_v55 = vsel %vm74_vm0, %v226_v23, 0.0  ;;  %v229_v56 = vmul.f32 %v1377_v43, %v1377_v43 }
  0x3f   :  { %v137_v61 = vadd.f32 %v136_v14, %v135_v25  ;;  %v307_v63 = vsel %vm74_vm0, %v227_v0, 0.0  ;;  %v1378_v14 = vld [vmem:[#allocation4_spill] sm:$0xff]  ;;  %v230_v25 = vmul.f32 %v1379_v50, %v1379_v50 }
  0x40   :  { %v300_v10 = vadd.f32 %v299_v48, %v298_v39  ;;  %v309_v13 = vsel %vm74_vm0, %v228_v54, 0.0  ;;  %v1380_v48 = vld [vmem:[#allocation5_spill] sm:$0xff]  ;;  %v311_v35 = vsel %vm74_vm0, %v229_v56, 0.0 }
  0x41   :  { %v139_v46 = vadd.f32 %v138_v29, %v137_v61  ;;  %v1381_v39 = vld [vmem:[#allocation41_spill] sm:$0xff]  ;;  %v313_v0 = vsel %vm74_vm0, %v230_v25, 0.0 }
  0x42   :  { %v302_v38 = vadd.f32 %v301_v11, %v300_v10  ;;  %v231_v61 = vmul.f32 %v1381_v39, %v1381_v39  ;;  %v1382_v11 = vld [vmem:[#allocation6_spill] sm:$0xff] }
  0x43   :  { %v141_v51 = vadd.f32 %v1374_v15, %v139_v46  ;;  %v1383_v46 = vld [vmem:[#allocation42_spill] sm:$0xff] }
  0x44   :  { %v304_v6 = vadd.f32 %v303_v59, %v302_v38  ;;  %v232_v1 = vmul.f32 %v1383_v46, %v1383_v46  ;;  %v1384_v38 = vld [vmem:[#allocation7_spill] sm:$0xff]  ;;  %v315_v54 = vsel %vm74_vm0, %v231_v61, 0.0 }
  0x45   :  { %v143_v37 = vadd.f32 %v1376_v36, %v141_v51  ;;  %v1385_v51 = vld [vmem:[#allocation43_spill] sm:$0xff] }
  0x46   :  { %v306_v31 = vadd.f32 %v305_v55, %v304_v6  ;;  %v233_v17 = vmul.f32 %v1385_v51, %v1385_v51  ;;  %v1386_v6 = vld [vmem:[#allocation8_spill] sm:$0xff]  ;;  %v317_v56 = vsel %vm74_vm0, %v232_v1, 0.0 }
  0x47   :  { %v145_v16 = vadd.f32 %v1378_v14, %v143_v37  ;;  %v1387_v37 = vld [vmem:[#allocation44_spill] sm:$0xff] }
  0x48   :  { %v308_v19 = vadd.f32 %v307_v63, %v306_v31  ;;  %v234_v43 = vmul.f32 %v1387_v37, %v1387_v37  ;;  %v1388_v31 = vld [vmem:[#allocation9_spill] sm:$0xff]  ;;  %v319_v25 = vsel %vm74_vm0, %v233_v17, 0.0 }
  0x49   :  { %v147_v29 = vadd.f32 %v1380_v48, %v145_v16  ;;  %v1389_v16 = vld [vmem:[#allocation45_spill] sm:$0xff] }
  0x4a   :  { %v310_v23 = vadd.f32 %v309_v13, %v308_v19  ;;  %v235_v50 = vmul.f32 %v1389_v16, %v1389_v16  ;;  %v1390_v19 = vld [vmem:[#allocation10_spill] sm:$0xff]  ;;  %v321_v61 = vsel %vm74_vm0, %v234_v43, 0.0 }
  0x4b   :  { %v149_v10 = vadd.f32 %v1382_v11, %v147_v29  ;;  %v1391_v29 = vld [vmem:[#allocation46_spill] sm:$0xff] }
  0x4c   :  { %v312_v59 = vadd.f32 %v311_v35, %v310_v23  ;;  %v236_v39 = vmul.f32 %v1391_v29, %v1391_v29  ;;  %v1392_v23 = vld [vmem:[#allocation11_spill] sm:$0xff]  ;;  %v323_v1 = vsel %vm74_vm0, %v235_v50, 0.0 }
  0x4d   :  { %v151_v15 = vadd.f32 %v1384_v38, %v149_v10  ;;  %v1393_v10 = vld [vmem:[#allocation47_spill] sm:$0xff] }
  0x4e   :  { %v314_v55 = vadd.f32 %v313_v0, %v312_v59  ;;  %v237_v46 = vmul.f32 %v1393_v10, %v1393_v10  ;;  %v1394_v59 = vld [vmem:[#allocation12_spill] sm:$0xff]  ;;  %v325_v17 = vsel %vm74_vm0, %v236_v39, 0.0 }
  0x4f   :  { %v153_v36 = vadd.f32 %v1386_v6, %v151_v15  ;;  %v1395_v15 = vld [vmem:[#allocation51_spill] sm:$0xff] }
  0x50   :  { %v316_v63 = vadd.f32 %v315_v54, %v314_v55  ;;  %v238_v51 = vmul.f32 %v1395_v15, %v1395_v15  ;;  %v1396_v55 = vld [vmem:[#allocation13_spill] sm:$0xff]  ;;  %v327_v43 = vsel %vm74_vm0, %v237_v46, 0.0 }
  0x51   :  { %v155_v14 = vadd.f32 %v1388_v31, %v153_v36  ;;  %v1397_v36 = vld [vmem:[#allocation52_spill] sm:$0xff]  ;;  %v1402_v46 = vld [vmem:[#allocation17_spill] sm:$0xff] }
  0x52   :  { %v318_v13 = vadd.f32 %v317_v56, %v316_v63  ;;  %v239_v37 = vmul.f32 %v1397_v36, %v1397_v36  ;;  %v1398_v63 = vld [vmem:[#allocation14_spill] sm:$0xff]  ;;  %v329_v50 = vsel %vm74_vm0, %v238_v51, 0.0 }
  0x53   :  { %v157_v48 = vadd.f32 %v1390_v19, %v155_v14  ;;  %v1399_v14 = vld [vmem:[#allocation53_spill] sm:$0xff] }
  0x54   :  { %v320_v35 = vadd.f32 %v319_v25, %v318_v13  ;;  %v240_v16 = vmul.f32 %v1399_v14, %v1399_v14  ;;  %v1400_v13 = vld [vmem:[#allocation15_spill] sm:$0xff]  ;;  %v331_v29 = vsel %vm74_vm0, %v239_v37, 0.0  ;;  %v1406_v37 = vld [vmem:[#allocation21_spill] sm:$0xff] }
  0x55   :  { %v159_v11 = vadd.f32 %v1392_v23, %v157_v48  ;;  %v241_v48 = vmul.f32 %v1141_v57, %v1141_v57  ;;  %v242_v23 = vmul.f32 %v1158_v33, %v1158_v33 }
  0x56   :  { %v322_v0 = vadd.f32 %v321_v61, %v320_v35  ;;  %v1401_v61 = vld [vmem:[#allocation16_spill] sm:$0xff] }
  0x57   :  { %v161_v38 = vadd.f32 %v1394_v59, %v159_v11  ;;  %v333_v11 = vsel %vm74_vm0, %v240_v16, 0.0  ;;  %v337_v57 = vsel %vm74_vm0, %v242_v23, 0.0  ;;  %v1408_v16 = vld [vmem:[#allocation23_spill] sm:$0xff]  ;;  %v1412_v23 = vld [vmem:[#allocation28_spill] sm:$0xff] }
  0x58   :  { %v324_v54 = vadd.f32 %v323_v1, %v322_v0  ;;  %v335_v0 = vsel %vm74_vm0, %v241_v48, 0.0 }
  0x59   :  { %v163_v6 = vadd.f32 %v1396_v55, %v161_v38  ;;  %v1403_v38 = vld [vmem:[#allocation18_spill] sm:$0xff] }
  0x5a   :  { %v326_v56 = vadd.f32 %v325_v17, %v324_v54  ;;  %v1404_v17 = vld [vmem:[#allocation19_spill] sm:$0xff] }
  0x5b   :  { %v165_v31 = vadd.f32 %v1398_v63, %v163_v6  ;;  %v1405_v6 = vld [vmem:[#allocation20_spill] sm:$0xff]  ;;  %v1407_v63 = vld [vmem:[#allocation22_spill] sm:$0xff] }
  0x5c   :  { %v328_v25 = vadd.f32 %v327_v43, %v326_v56 }
  0x5d   :  { %v167_v19 = vadd.f32 %v1400_v13, %v165_v31  ;;  %v1409_v13 = vld [vmem:[#allocation24_spill] sm:$0xff] }
  0x5e   :  { %v330_v39 = vadd.f32 %v329_v50, %v328_v25 }
  0x5f   :  { %v169_v35 = vadd.f32 %v1401_v61, %v167_v19  ;;  %v1411_v61 = vld [vmem:[#allocation27_spill] sm:$0xff] }
  0x60   :  { %v332_v10 = vadd.f32 %v331_v29, %v330_v39  ;;  %v1410_v29 = vld [vmem:[#allocation25_spill] sm:$0xff] }
  0x61   :  { %v171_v1 = vadd.f32 %v1402_v46, %v169_v35 }
  0x62   :  { %v334_v59 = vadd.f32 %v333_v11, %v332_v10  ;;  %v1413_v10 = vld [vmem:[#allocation29_spill] sm:$0xff] }
  0x63   :  { %v173_v15 = vadd.f32 %v1403_v38, %v171_v1  ;;  %v1414_v1 = vld [vmem:[#allocation31_spill] sm:$0xff] }
  0x64   :  { %v336_v51 = vadd.f32 %v335_v0, %v334_v59  ;;  %v1415_v59 = vld [vmem:[#allocation32_spill] sm:$0xff] }
  0x65   :  { %v175_v54 = vadd.f32 %v1404_v17, %v173_v15  ;;  %v1416_v15 = vld [vmem:[#allocation33_spill] sm:$0xff] }
  0x66   :  { %v338_v55 = vadd.f32 %v337_v57, %v336_v51  ;;  %v1417_v51 = vld [vmem:[#allocation34_spill] sm:$0xff] }
  0x67   :  { %v177_v36 = vadd.f32 %v1405_v6, %v175_v54 }
  0x68   :  { %v340_v33 = vadd.f32 %v1051_v2, %v338_v55 }
  0x69   :  { %v179_v43 = vadd.f32 %v1406_v37, %v177_v36 }
  0x6a   :  { %v342_v56 = vadd.f32 %v1054_v24, %v340_v33 }
  0x6b   :  { %v181_v31 = vadd.f32 %v1407_v63, %v179_v43 }
  0x6c   :  { %v344_v14 = vadd.f32 %v1057_v9, %v342_v56 }
  0x6d   :  { %v183_v50 = vadd.f32 %v1408_v16, %v181_v31 }
  0x6e   :  { %v346_v25 = vadd.f32 %v1060_v42, %v344_v14 }
  0x6f   :  { %v185_v19 = vadd.f32 %v1409_v13, %v183_v50 }
  0x70   :  { %v348_v48 = vadd.f32 %v1064_v5, %v346_v25 }
  0x71   :  { %v187_v39 = vadd.f32 %v1410_v29, %v185_v19 }
  0x72   :  { %v350_v2 = vadd.f32 %v1067_v49, %v348_v48 }
  0x73   :  { %v189_v35 = vadd.f32 %v1411_v61, %v187_v39 }
  0x74   :  { %v352_v24 = vadd.f32 %v1070_v12, %v350_v2 }
  0x75   :  { %v191_v11 = vadd.f32 %v1412_v23, %v189_v35 }
  0x76   :  { %v354_v9 = vadd.f32 %v1073_v18, %v352_v24 }
  0x77   :  { %v193_v46 = vadd.f32 %v1413_v10, %v191_v11 }
  0x78   :  { %v356_v42 = vadd.f32 %v1076_v20, %v354_v9 }
  0x79   :  { %v195_v0 = vadd.f32 %v1414_v1, %v193_v46 }
  0x7a   :  { %v358_v5 = vadd.f32 %v1079_v21, %v356_v42 }
  0x7b   :  { %v197_v38 = vadd.f32 %v1415_v59, %v195_v0 }
  0x7c   :  { %v360_v49 = vadd.f32 %v1083_v22, %v358_v5 }
  0x7d   :  { %v199_v57 = vadd.f32 %v1416_v15, %v197_v38 }
  0x7e   :  { %v362_v12 = vadd.f32 %v1086_v3, %v360_v49 }
  0x7f   :  { %v201_v17 = vadd.f32 %v1417_v51, %v199_v57 }
  0x80   :  { %v364_v18 = vadd.f32 %v1089_v8, %v362_v12 }
  0x81   :  { %v202_v54 = vrot.slane %v201_v17, 4 }
  0x82   :  { %v366_v55 = vadd.f32 %v1092_v26, %v364_v18 }
  0x83   :  { %v203_v20 = vadd.f32 %v202_v54, %v201_v17 }
  0x84   :  { %v368_v6 = vadd.f32 %v1095_v27, %v366_v55 }
  0x85   :  { %v204_v36 = vrot.slane %v203_v20, 2 }
  0x86   :  { %v370_v21 = vadd.f32 %v1098_v28, %v368_v6 }
  0x87   :  { %v205_v33 = vadd.f32 %v204_v36, %v203_v20 }
  0x88   :  { %v372_v22 = vadd.f32 %v1102_v32, %v370_v21 }
  0x89   :  { %v206_v37 = vrot.slane %v205_v33, 1 }
  0x8a   :  { %v374_v3 = vadd.f32 %v1105_v34, %v372_v22 }
  0x8b   :  { %v207_v43 = vadd.f32 %v206_v37, %v205_v33 }
  0x8c   :  { %v376_v56 = vadd.f32 %v1108_v40, %v374_v3 }
  0x8d   :  { %209 = vst.msk [vmem:[%s1292_s1] sm:$0x1] %vm208_vm1, %v207_v43 }
  0x8e   :  { %v378_v8 = vadd.f32 %v1111_v41, %v376_v56 }
  0x90   :  { %v380_v26 = vadd.f32 %v1114_v45, %v378_v8 }
  0x92   :  { %v382_v27 = vadd.f32 %v1117_v62, %v380_v26 }
  0x94   :  { %v384_v28 = vadd.f32 %v1121_v47, %v382_v27 }
  0x96   :  { %v386_v32 = vadd.f32 %v1124_v44, %v384_v28 }
  0x98   :  { %v388_v34 = vadd.f32 %v1127_v52, %v386_v32 }
  0x9a   :  { %v390_v63 = vadd.f32 %v1130_v53, %v388_v34 }
  0x9c   :  { %v392_v40 = vadd.f32 %v1133_v30, %v390_v63 }
  0x9e   :  { %v394_v31 = vadd.f32 %v1136_v58, %v392_v40 }
  0xa0   :  { %v396_v14 = vadd.f32 %v1145_v60, %v394_v31 }
  0xa2   :  { %v398_v41 = vadd.f32 %v1148_v4, %v396_v14 }
  0xa4   :  { %v400_v45 = vadd.f32 %v1151_v7, %v398_v41 }
  0xa6   :  { %v401_v16 = vrot.slane %v400_v45, 4 }
  0xa8   :  { %v402_v62 = vadd.f32 %v401_v16, %v400_v45 }
  0xaa   :  { %v403_v50 = vrot.slane %v402_v62, 2 }
  0xac   :  { %v404_v47 = vadd.f32 %v403_v50, %v402_v62 }
  0xae   :  { %v405_v25 = vrot.slane %v404_v47, 1 }
  0xb0   :  { %v406_v44 = vadd.f32 %v405_v25, %v404_v47 }
  0xb2   :  { %407 = vst.msk [vmem:[%s1293_s2] sm:$0x1] %vm208_vm1, %v406_v44 }

// kernel: encoder_block_forward.4
= control target key start
LH: loop header
LB: loop body
LE: loop exit
PB: predicated region body
PF: predicated region fallthrough
CT: control target
= control target key end

     0   :  { %s1594_s13 = smov 0   ;;  %s1596_s14 = smov 0   ;;  %s1893_s0 = inlined_call_operand.vmem [shape: f32[2,9,9,16], index: 0, kind: input, shape index: {}, may-alias: {0,1}]   ;;  %s1894_s1 = inlined_call_operand.vmem [shape: f32[2,9,9,16], index: 1, kind: input, shape index: {}, may-alias: {0,1}]   ;;  %s1895_s2 = inlined_call_operand.vmem [shape: f32[9,1,16], index: 2, kind: input, shape index: {}, may-alias: {2,3}]   ;;  %s1896_s3 = inlined_call_operand.vmem [shape: f32[9,1,16], index: 3, kind: input, shape index: {}, may-alias: {2,3}]   ;;  %s1897_s4 = inlined_call_operand.vmem [shape: f32[1,9,16], index: 4, kind: input, shape index: {}]   ;;  %s1898_s5 = inlined_call_operand.vmem [shape: f32[1,16], index: 5, kind: input, shape index: {}]   ;;  %s1899_s6 = inlined_call_operand.vmem [shape: f32[1,16], index: 6, kind: input, shape index: {}]   ;;  %s1900_s7 = inlined_call_operand.vmem [shape: bf16[2,32,8], index: 7, kind: input, shape index: {}]   ;;  %s1901_s8 = inlined_call_operand.vmem [shape: bf16[2,8,8,8], index: 8, kind: output, shape index: {0}]   ;;  %s1902_s9 = inlined_call_operand.vmem [shape: f32[2,1,8], index: 9, kind: output, shape index: {1}]   ;;  %s1903_s10 = inlined_call_operand.vmem [shape: f32[2,1,8], index: 10, kind: output, shape index: {2}]  }
   0x1   :  { %s1598_s15 = smov 0  }
   0x2 LB: > { %s33_s16 = sadd.s32 1, %s1531_s14  ;;  %p1362_p0 = scmp.ge.s32.totalorder %s1535_s15, 1  ;;  %s1535_s15 = sphi %s1598_s15, %s21_s15   ;;  %s1531_s14 = sphi %s1596_s14, %s1905_s14   ;;  %s1527_s13 = sphi %s1594_s13, %s1904_s13  }
   0x3   : > { %p35_p1 = scmp.ge.s32.totalorder %s33_s16, 2  ;;  %p407_p2 = scmp.lt.s32.totalorder %s1535_s15, 3 }
   0x5   : > { %s1907_s16 = smov (%p35_p1, %s33_s16), 0  ;;  %p408_p3 = pnand %p1362_p0, %p407_p2 }
   0x6   : > { %p495_p4 = scmp.lt.s32.totalorder (!%p408_p3), %s1527_s13, 1  ;;  %v1618_v0 = vld [vmem:[%s1898_s5] ss:$0 sm:$0xff] (!%p408_p3)  ;;  %v1370_v21 = vld [vmem:[%s1895_s2 + $0x1] ss:$0 sm:$0xff] (!%p408_p3)  ;;  %vm801_vm0 = vcmask (!%p408_p3), 1046528  }
   0x7   : > { %411 = sbr.rel (%p408_p3) target bundleno = 428 (0x1ac), region = 52  ;;  %v1630_v1 = vld [vmem:[%s1899_s6] ss:$0 sm:$0xff] (!%p408_p3)  ;;  %v1373_v28 = vld [vmem:[%s1895_s2 + $0x4] ss:$0 sm:$0xff] (!%p408_p3)  ;;  %v1510_v46 = vld [vmem:[%s1900_s7 + $0x10] sm:$0xff] (!%p408_p3)  }
   0x8   : > { %v1369_v20 = vld [vmem:[%s1895_s2] ss:$0 sm:$0xff] (!%p408_p3)  ;;  %v1671_v29 = vld [vmem:[%s1897_s4 + $0x8] sm:$0x1] (!%p408_p3)  ;;  %1428 = vmatprep.subr.bf16.mxu1 (!%p408_p3), %v1510_v46  ;;  %s1537_s27 = smov (!%p408_p3), 16  }
   0x9   : > { %v1663_v26 = vld [vmem:[%s1897_s4] sm:$0xff] (!%p408_p3)  ;;  %1429 = vmatpush3.bf16.msra.mxu1 (!%p408_p3), %v1510_v46 }
   0xa   : > { %v1509_v35 = vld [vmem:[%s1900_s7] sm:$0xff] (!%p408_p3)  }
   0xb   : > { %1440 = vmatprep.subr.bf16.mxu0 (!%p408_p3), %v1509_v35 }
   0xc   : > { %1441 = vmatpush3.bf16.msra.mxu0 (!%p408_p3), %v1509_v35 }
   0xe   : > { %s1909_s13 = smov (!%p495_p4, %s1527_s13), 1 }
   0xf   : > { %s1460_s17 = smul.u32 144, %s1909_s13  ;;  %s1828_s12 = scalar_lea.vmem %s1902_s9, %s1909_s13 }
  0x10   : > { %s1407_s20 = sshll.u32 %s1909_s13, 5 }
  0x11   : > { %s1625_s22 = scalar_lea.vmem %s1893_s0, %s1460_s17  ;;  %s1406_s30 = sadd.s32 128, %s1460_s17 }
  0x12   : > { %v564_v2 = vld [vmem:[%s1625_s22] sm:$0xff]  ;;  %v565_v3 = vld [vmem:[%s1625_s22 + $0x8] sm:$0x1]  ;;  %v566_v4 = vld [vmem:[%s1625_s22 + $0x10] sm:$0xff]  ;;  %s520_s19 = scalar_lea.vmem %s1894_s1, %s1406_s30  ;;  %s1844_s23 = scalar_lea.vmem %s1901_s8, %s1407_s20 }
  0x13   : > { %v567_v5 = vld [vmem:[%s1625_s22 + $0x18] sm:$0x1]  ;;  %v594_v6 = vmul.f32 %v1618_v0, %v564_v2  ;;  %v595_v7 = vmul.f32 %v1618_v0, %v565_v3  ;;  %v596_v8 = vmul.f32 %v1618_v0, %v566_v4  ;;  %v572_v9 = vld [vmem:[%s1625_s22 + $0x40] sm:$0xff]  ;;  %v573_v10 = vld [vmem:[%s1625_s22 + $0x48] sm:$0x1] }
  0x14   : > { %v597_v11 = vmul.f32 %v1618_v0, %v567_v5  ;;  %v602_v12 = vmul.f32 %v1618_v0, %v572_v9  ;;  %v603_v13 = vmul.f32 %v1618_v0, %v573_v10  ;;  %v568_v14 = vld [vmem:[%s1625_s22 + $0x20] sm:$0xff]  ;;  %v569_v15 = vld [vmem:[%s1625_s22 + $0x28] sm:$0x1]  ;;  %v570_v40 = vld [vmem:[%s1625_s22 + $0x30] sm:$0xff] }
  0x15   : > { %v616_v16 = vadd.f32 %v1630_v1, %v594_v6  ;;  %v617_v17 = vadd.f32 %v1630_v1, %v595_v7  ;;  %v618_v18 = vadd.f32 %v1630_v1, %v596_v8  ;;  %v598_v19 = vmul.f32 %v1618_v0, %v568_v14  ;;  %v571_v41 = vld [vmem:[%s1625_s22 + $0x38] sm:$0x1]  ;;  %v1371_v3 = vld [vmem:[%s1895_s2 + $0x2] ss:$0 sm:$0xff]  ;;  %v574_v9 = vld [vmem:[%s1625_s22 + $0x50] sm:$0xff] }
  0x16   : > { %v619_v22 = vadd.f32 %v1630_v1, %v597_v11  ;;  %v624_v23 = vadd.f32 %v1630_v1, %v602_v12  ;;  %v625_v24 = vadd.f32 %v1630_v1, %v603_v13  ;;  %v599_v25 = vmul.f32 %v1618_v0, %v569_v15  ;;  %v575_v10 = vld [vmem:[%s1625_s22 + $0x58] sm:$0x1]  ;;  %v576_v13 = vld [vmem:[%s1625_s22 + $0x60] sm:$0xff] }
  0x17   : > { %vm632_vm1 = vcmp.ge.f32.partialorder %v616_v16, 0.0  ;;  %vm633_vm2 = vcmp.ge.f32.partialorder %v617_v17, 0.0  ;;  %vm634_vm3 = vcmp.ge.f32.partialorder %v618_v18, 0.0  ;;  %v648_v27 = vmul.f32 0.01, %v616_v16 }
  0x18   : > { %vm635_vm4 = vcmp.ge.f32.partialorder %v619_v22, 0.0  ;;  %v649_v30 = vmul.f32 0.01, %v617_v17  ;;  %v650_v31 = vmul.f32 0.01, %v618_v18  ;;  %vm640_vm5 = vcmp.ge.f32.partialorder %v624_v23, 0.0 }
  0x19   : > { %v651_v32 = vmul.f32 0.01, %v619_v22  ;;  %v664_v33 = vsel %vm632_vm1, %v616_v16, %v648_v27  ;;  %vm641_vm6 = vcmp.ge.f32.partialorder %v625_v24, 0.0  ;;  %v656_v34 = vmul.f32 0.01, %v624_v23 }
  0x1a   : > { %v665_v36 = vsel %vm633_vm2, %v617_v17, %v649_v30  ;;  %v666_v37 = vsel %vm634_vm3, %v618_v18, %v650_v31  ;;  %v728_v38 = vmul.f32 %v1369_v20, %v664_v33  ;;  %v657_v39 = vmul.f32 0.01, %v625_v24  ;;  %v577_v17 = vld [vmem:[%s1625_s22 + $0x68] sm:$0x1]  ;;  %v1372_v18 = vld [vmem:[%s1895_s2 + $0x3] ss:$0 sm:$0xff] }
  0x1b   : > { %v667_v42 = vsel %vm635_vm4, %v619_v22, %v651_v32  ;;  %v729_v43 = vmul.f32 %v1369_v20, %v665_v36  ;;  %v730_v44 = vmul.f32 %v1370_v21, %v666_v37  ;;  %v672_v45 = vsel %vm640_vm5, %v624_v23, %v656_v34 }
  0x1c   : > { %v731_v47 = vmul.f32 %v1370_v21, %v667_v42  ;;  %v1682_v48 = vmul.f32 %v728_v38, %v1663_v26  ;;  %v673_v49 = vsel %vm641_vm6, %v625_v24, %v657_v39  ;;  %v736_v50 = vmul.f32 %v1373_v28, %v672_v45  ;;  %v578_v45 = vld [vmem:[%s1625_s22 + $0x70] sm:$0xff] }
  0x1d   : > { %v745_v51 = vmul.f32 %v729_v43, %v1671_v29  ;;  %v1687_v52 = vmul.f32 %v730_v44, %v1663_v26  ;;  %v737_v53 = vmul.f32 %v1373_v28, %v673_v49  ;;  %v600_v54 = vmul.f32 %v1618_v0, %v570_v40  ;;  %v1374_v44 = vld [vmem:[%s1895_s2 + $0x5] ss:$0 sm:$0xff] }
  0x1e   : > { %v747_v55 = vmul.f32 %v731_v47, %v1671_v29  ;;  %v802_v56 = vrot.slane %v1682_v48, 1  ;;  %v1693_v57 = vmul.f32 %v736_v50, %v1663_v26  ;;  %v601_v58 = vmul.f32 %v1618_v0, %v571_v41  ;;  %v579_v47 = vld [vmem:[%s1625_s22 + $0x78] sm:$0x1] }
  0x1f   : > { %v803_v59 = vrot.slane %v745_v51, 1  ;;  %v805_v60 = vrot.slane %v1687_v52, 1  ;;  %v753_v61 = vmul.f32 %v737_v53, %v1671_v29  ;;  %v620_v62 = vadd.f32 %v1630_v1, %v598_v19 }
  0x20   : > { %v806_v63 = vrot.slane %v747_v55, 1  ;;  %v814_v2 = vrot.slane %v1693_v57, 1  ;;  %v621_v4 = vadd.f32 %v1630_v1, %v599_v25  ;;  %v622_v5 = vadd.f32 %v1630_v1, %v600_v54  ;;  %v1375_v55 = vld [vmem:[%s1895_s2 + $0x6] ss:$0 sm:$0xff] }
  0x21   : > { %v804_v6 = vsel %vm801_vm0, %v802_v56, %v803_v59  ;;  %v815_v7 = vrot.slane %v753_v61, 1  ;;  %v623_v8 = vadd.f32 %v1630_v1, %v601_v58  ;;  %vm636_vm7 = vcmp.ge.f32.partialorder %v620_v62, 0.0 }
  0x22   : > { %v807_v11 = vsel %vm801_vm0, %v805_v60, %v806_v63  ;;  %vm637_vm8 = vcmp.ge.f32.partialorder %v621_v4, 0.0  ;;  %vm638_vm9 = vcmp.ge.f32.partialorder %v622_v5, 0.0  ;;  %v652_v12 = vmul.f32 0.01, %v620_v62 }
  0x23   : > { %v1489_v14 = vpack.i.bf16 %v807_v11, %v804_v6  ;;  %v816_v15 = vsel %vm801_vm0, %v814_v2, %v815_v7  ;;  %vm639_vm10 = vcmp.ge.f32.partialorder %v623_v8, 0.0  ;;  %v653_v16 = vmul.f32 0.01, %v621_v4  ;;  %v760_v2 = vld [vmem:[%s520_s19] sm:$0xff] }
  0x24   : > { %837 = vrot.lane.b32.xlu1 %v816_v15, %s1537_s27  ;;  %v654_v19 = vmul.f32 0.01, %v622_v5  ;;  %v655_v20 = vmul.f32 0.01, %v623_v8  ;;  %v668_v21 = vsel %vm636_vm7, %v620_v62, %v652_v12  ;;  %v604_v22 = vmul.f32 %v1618_v0, %v574_v9  ;;  %v1512_v9 = vld [vmem:[%s1900_s7 + $0x18] sm:$0xff]  }
  0x25   : > { %1490 = vrot.lane.b32.xlu0 %v1489_v14, %s1537_s27  ;;  %v669_v23 = vsel %vm637_vm8, %v621_v4, %v653_v16  ;;  %v732_v24 = vmul.f32 %v1371_v3, %v668_v21  ;;  %v605_v25 = vmul.f32 %v1618_v0, %v575_v10  ;;  %v606_v27 = vmul.f32 %v1618_v0, %v576_v13  ;;  %v1511_v4 = vld [vmem:[%s1900_s7 + $0x8] sm:$0xff]   ;;  %v1376_v21 = vld [vmem:[%s1895_s2 + $0x7] ss:$0 sm:$0xff] }
  0x26   : > { %v670_v28 = vsel %vm638_vm9, %v622_v5, %v654_v19  ;;  %v671_v30 = vsel %vm639_vm10, %v623_v8, %v655_v20  ;;  %v733_v31 = vmul.f32 %v1371_v3, %v669_v23  ;;  %v607_v32 = vmul.f32 %v1618_v0, %v577_v17  ;;  %v761_v3 = vld [vmem:[%s520_s19 + $0x8] sm:$0x1]  ;;  %1442 = vmatprep.subr.bf16.mxu0 %v1511_v4  ;;  %s1834_s19 = scalar_lea.vmem %s1903_s10, %s1909_s13 }
  0x27   : > { %v734_v33 = vmul.f32 %v1372_v18, %v670_v28  ;;  %v735_v34 = vmul.f32 %v1372_v18, %v671_v30  ;;  %v1727_v35 = vmul.f32 %v732_v24, %v1663_v26  ;;  %v626_v36 = vadd.f32 %v1630_v1, %v604_v22  ;;  %1430 = vmatprep.subr.bf16.mxu1 %v1512_v9 }
  0x28   : > { %v749_v37 = vmul.f32 %v733_v31, %v1671_v29  ;;  %v627_v38 = vadd.f32 %v1630_v1, %v605_v25  ;;  %v628_v39 = vadd.f32 %v1630_v1, %v606_v27  ;;  %v629_v40 = vadd.f32 %v1630_v1, %v607_v32  ;;  %1443 = vmatpush3.bf16.msra.mxu0 %v1511_v4 }
  0x29   : > { %v1737_v41 = vmul.f32 %v734_v33, %v1663_v26  ;;  %v751_v42 = vmul.f32 %v735_v34, %v1671_v29  ;;  %v808_v43 = vrot.slane %v1727_v35, 1  ;;  %vm642_vm11 = vcmp.ge.f32.partialorder %v626_v36, 0.0  ;;  %1431 = vmatpush3.bf16.msra.mxu1 %v1512_v9 }
  0x2a   : > { %v809_v46 = vrot.slane %v749_v37, 1  ;;  %vm643_vm12 = vcmp.ge.f32.partialorder %v627_v38, 0.0  ;;  %vm644_vm13 = vcmp.ge.f32.partialorder %v628_v39, 0.0  ;;  %vm645_vm14 = vcmp.ge.f32.partialorder %v629_v40, 0.0 }
  0x2b   : > { %v811_v49 = vrot.slane %v1737_v41, 1  ;;  %v812_v50 = vrot.slane %v751_v42, 1  ;;  %v658_v51 = vmul.f32 0.01, %v626_v36  ;;  %v659_v53 = vmul.f32 0.01, %v627_v38 }
  0x2c   : > { %v810_v54 = vsel %vm801_vm0, %v808_v43, %v809_v46  ;;  %v660_v56 = vmul.f32 0.01, %v628_v39  ;;  %v661_v58 = vmul.f32 0.01, %v629_v40  ;;  %v608_v59 = vmul.f32 %v1618_v0, %v578_v45 }
  0x2d   : > { %v813_v60 = vsel %vm801_vm0, %v811_v49, %v812_v50  ;;  %v674_v61 = vsel %vm642_vm11, %v626_v36, %v658_v51  ;;  %v675_v62 = vsel %vm643_vm12, %v627_v38, %v659_v53  ;;  %v609_v63 = vmul.f32 %v1618_v0, %v579_v47 }
  0x2e   : > { %v1494_v5 = vpack.i.bf16 %v813_v60, %v810_v54  ;;  %v676_v6 = vsel %vm644_vm13, %v628_v39, %v660_v56  ;;  %v677_v7 = vsel %vm645_vm14, %v629_v40, %v661_v58  ;;  %v738_v8 = vmul.f32 %v1374_v44, %v674_v61  ;;  %v1378_v39 = vld [vmem:[%s1896_s3 + $0x8] ss:$0 sm:$0xff] }
  0x2f   : > { %v739_v10 = vmul.f32 %v1374_v44, %v675_v62  ;;  %v740_v11 = vmul.f32 %v1375_v55, %v676_v6  ;;  %v741_v12 = vmul.f32 %v1375_v55, %v677_v7  ;;  %v630_v13 = vadd.f32 %v1630_v1, %v608_v59 }
  0x30   : > { %1495 = vrot.lane.b32.xlu0 %v1494_v5, %s1537_s27  ;;  %v1770_v14 = vmul.f32 %v738_v8, %v1663_v26  ;;  %v631_v15 = vadd.f32 %v1630_v1, %v609_v63  ;;  %v763_v16 = vmul.f32 %v1618_v0, %v760_v2  ;;  %v764_v17 = vmul.f32 %v1618_v0, %v761_v3 }
  0x31   : > { %v755_v18 = vmul.f32 %v739_v10, %v1671_v29  ;;  %v1777_v19 = vmul.f32 %v740_v11, %v1663_v26  ;;  %v757_v20 = vmul.f32 %v741_v12, %v1671_v29  ;;  %vm646_vm15 = vcmp.ge.f32.partialorder %v630_v13, 0.0 }
  0x32   : > { %v817_v22 = vrot.slane %v1770_v14, 1  ;;  %vm647_vm1 = vcmp.ge.f32.partialorder %v631_v15, 0.0  ;;  %v662_v23 = vmul.f32 0.01, %v630_v13  ;;  %v663_v24 = vmul.f32 0.01, %v631_v15 }
  0x33   : > { %v818_v0 = vrot.slane %v755_v18, 1  ;;  %v820_v25 = vrot.slane %v1777_v19, 1  ;;  %v821_v27 = vrot.slane %v757_v20, 1  ;;  %v765_v28 = vadd.f32 %v1630_v1, %v763_v16 }
  0x34   : > { %v678_v30 = vsel %vm646_vm15, %v630_v13, %v662_v23  ;;  %v679_v31 = vsel %vm647_vm1, %v631_v15, %v663_v24  ;;  %v766_v32 = vadd.f32 %v1630_v1, %v764_v17  ;;  %vm856_vm4 = vcmask 130048  }
  0x35   : > { %v819_v33 = vsel %vm801_vm0, %v817_v22, %v818_v0  ;;  %v822_v34 = vsel %vm801_vm0, %v820_v25, %v821_v27  ;;  %v742_v36 = vmul.f32 %v1376_v21, %v678_v30  ;;  %v743_v37 = vmul.f32 %v1376_v21, %v679_v31 }
  0x36   : > { %v1499_v38 = vpack.i.bf16 %v822_v34, %v819_v33  ;;  %vm767_vm2 = vcmp.ge.f32.partialorder %v765_v28, 0.0  ;;  %vm768_vm3 = vcmp.ge.f32.partialorder %v766_v32, 0.0  ;;  %v769_v40 = vmul.f32 0.01, %v765_v28 }
  0x37   : > { %v758_v42 = vmul.f32 %v742_v36, %v1663_v26  ;;  %v759_v43 = vmul.f32 %v743_v37, %v1671_v29  ;;  %v770_v44 = vmul.f32 0.01, %v766_v32  ;;  %vm916_vm5 = vcmask 261120  }
  0x38   : > { %1500 = vrot.lane.b32.xlu1 %v1499_v38, %s1537_s27  ;;  %v771_v1 = vsel %vm767_vm2, %v765_v28, %v769_v40  ;;  %vm1097_vm6 = vcmask 60416   ;;  %vm1114_vm7 = vcmask 64512  }
  0x39   : > { %v772_v45 = vsel %vm768_vm3, %v766_v32, %v770_v44  ;;  %v779_v46 = vmul.f32 %v1378_v39, %v771_v1  ;;  %v823_v49 = vrot.slane %v758_v42, 1  ;;  %v824_v50 = vrot.slane %v759_v43, 1 }
  0x3a   : > { %v780_v47 = vmul.f32 %v1378_v39, %v772_v45 }
  0x3b   : > { %v781_v51 = vmul.f32 %v779_v46, %v1663_v26  ;;  %v825_v55 = vsel %vm801_vm0, %v823_v49, %v824_v50 }
  0x3c   : > { %v782_v53 = vmul.f32 %v780_v47, %v1671_v29 }
  0x3d   : > { %v826_v54 = vrot.slane %v781_v51, 1 }
  0x3e   : > { %v827_v56 = vrot.slane %v782_v53, 1 }
  0x40   : > { %v828_v58 = vsel %vm801_vm0, %v826_v54, %v827_v56  ;;  %vm1110_vm0 = vcmask 57344  }
  0x41   : > { %v1504_v59 = vpack.i.bf16 %v828_v58, %v825_v55 }
  0x43   : > { %1505 = vrot.lane.b32.xlu0 %v1504_v59, %s1537_s27 }
  0x96   : > { %v838_v2 = vpop.permute.xlu1 %837 }
  0x97   : > { %v1491_v60 = vpop.permute.xlu0 %1490  ;;  %v861_v4 = vsel %vm856_vm4, %v1693_v57, %v838_v2 }
  0x98   : > { %v1493_v61 = vunpack.i.h.bf16 %v1491_v60  ;;  %v1492_v62 = vunpack.i.l.bf16 %v1491_v60 }
  0x9a   : > { %v857_v63 = vsel %vm856_vm4, %v1682_v48, %v1492_v62  ;;  %v858_v26 = vsel %vm856_vm4, %v1687_v52, %v1493_v61 }
  0x9b   : > { %v1412_v29 = vpack.c.bf16 %v858_v26, %v857_v63 }
  0x9d   : > { %1444 = vmatprep.mubr.msk.bf16.mxu0 %vm916_vm5, %v1412_v29 }
  0xa2   : > { %v1496_v3 = vpop.permute.xlu0 %1495 }
  0xa3   : > { %v1498_v5 = vunpack.i.h.bf16 %v1496_v3  ;;  %v1497_v6 = vunpack.i.l.bf16 %v1496_v3 }
  0xa5   : > { %v859_v7 = vsel %vm856_vm4, %v1727_v35, %v1497_v6  ;;  %v860_v48 = vsel %vm856_vm4, %v1737_v41, %v1498_v5 }
  0xa6   : > { %v1408_v8 = vpack.c.bf16 %v859_v7, %v858_v26  ;;  %v1409_v9 = vpack.c.bf16 %v861_v4, %v860_v48  ;;  %v1413_v52 = vpack.c.bf16 %v860_v48, %v859_v7 }
  0xa8   : > { %1432 = vmatprep.mubr.msk.bf16.mxu1 %vm916_vm5, %v1408_v8  ;;  %1445 = vmatmul.mubr.msk.bf16.vlgmr.msra.gmra.mrb[0].mxu0 %vm916_vm5, %v1413_v52 }
  0xa9   : > { %1433 = vmatmul.mubr.msk.bf16.vlgmr.msra.gmra.mrb[0].mxu1 %vm916_vm5, %v1409_v9 }
  0xaa   : > { %v1501_v10 = vpop.permute.xlu1 %1500 }
  0xab   : > { %v1503_v11 = vunpack.i.h.bf16 %v1501_v10  ;;  %v1502_v57 = vunpack.i.l.bf16 %v1501_v10 }
  0xad   : > { %v863_v12 = vsel %vm856_vm4, %v1777_v19, %v1503_v11  ;;  %v862_v35 = vsel %vm856_vm4, %v1770_v14, %v1502_v57  ;;  %v1538_v14 = vmov 0.0  }
  0xae   : > { %v1410_v41 = vpack.c.bf16 %v863_v12, %v862_v35  ;;  %v1414_v13 = vpack.c.bf16 %v862_v35, %v861_v4  ;;  %1111 = vst.msk [vmem:[%s1828_s12] sm:$0x1] %vm1110_vm0, %v1538_v14  ;;  %1112 = vst.msk [vmem:[%s1834_s19] sm:$0x1] %vm1110_vm0, %v1538_v14 }
  0xb0   : > { %1448 = vmatprep.mubr.msk.bf16.mxu0 %vm916_vm5, %v1414_v13  ;;  %1436 = vmatprep.mubr.msk.bf16.mxu1 %vm916_vm5, %v1410_v41 }
  0xb5   : > { %v1506_v15 = vpop.permute.xlu0 %1505 }
  0xb6   : > { %v1508_v16 = vunpack.i.h.bf16 %v1506_v15  ;;  %v1507_v17 = vunpack.i.l.bf16 %v1506_v15 }
  0xb8   : > { %v865_v18 = vsel %vm856_vm4, %v781_v51, %v1508_v16  ;;  %v864_v20 = vsel %vm856_vm4, %v758_v42, %v1507_v17 }
  0xb9   : > { %v1411_v21 = vpack.c.bf16 %v865_v18, %v864_v20  ;;  %v1415_v19 = vpack.c.bf16 %v864_v20, %v863_v12 }
  0xbb   : > { %1449 = vmatmul.mubr.msk.bf16.gmra.mrb[4].mxu0 %vm916_vm5, %v1415_v19  ;;  %1437 = vmatmul.mubr.msk.bf16.gmra.mrb[4].mxu1 %vm916_vm5, %v1411_v21 }
 0x17b   : > { %v1446_v22 = vpop.f32.mrb[0].mxu0 }
 0x17c   : > { %v1434_v23 = vpop.f32.mrb[0].mxu1  ;;  %v1058_v24 = vpop.f32.mrb[1].mxu0 }
 0x17d   : > { %v1067_v0 = vadd.f32 %v1446_v22, %v1434_v23  ;;  %v963_v25 = vpop.f32.mrb[1].mxu1  ;;  %v1447_v27 = vpop.f32.mrb[2].mxu0 }
 0x17e   : > { %v1059_v28 = vadd.f32 %v1058_v24, %v963_v25  ;;  %v1435_v30 = vpop.f32.mrb[2].mxu1  ;;  %v1061_v31 = vpop.f32.mrb[3].mxu0 }
 0x17f   : > { %v1091_v32 = vpack.c.bf16 %v1067_v0, %v1067_v0  ;;  %v1070_v33 = vadd.f32 %v1447_v27, %v1435_v30  ;;  %v966_v34 = vpop.f32.mrb[3].mxu1  ;;  %v1142_v39 = vmul.f32 %v1067_v0, %v1067_v0  ;;  %v1118_v46 = vsel %vm1114_vm7, %v1067_v0, 0.0 }
 0x180   : > { %v1089_v36 = vpack.c.bf16 %v1059_v28, %v1059_v28  ;;  %v1140_v37 = vmul.f32 %v1059_v28, %v1059_v28  ;;  %v1062_v38 = vadd.f32 %v1061_v31, %v966_v34  ;;  %v1115_v42 = vsel %vm1114_vm7, %v1059_v28, 0.0 }
 0x181   : > { %1100 = vst.msk [vmem:[%s1844_s23 + $0x8] sm:$0xf] %vm1097_vm6, %v1091_v32  ;;  %v1092_v40 = vpack.c.bf16 %v1070_v33, %v1070_v33  ;;  %v1143_v49 = vmul.f32 %v1070_v33, %v1070_v33  ;;  %v1151_v54 = vsel %vm1114_vm7, %v1142_v39, 0.0  ;;  %v1120_v55 = vsel %vm1114_vm7, %v1070_v33, 0.0 }
 0x182   : > { %1098 = vst.msk [vmem:[%s1844_s23] sm:$0xf] %vm1097_vm6, %v1089_v36  ;;  %v1090_v43 = vpack.c.bf16 %v1062_v38, %v1062_v38  ;;  %v1116_v44 = vsel %vm1114_vm7, %v1062_v38, 0.0  ;;  %v1141_v1 = vmul.f32 %v1062_v38, %v1062_v38  ;;  %v1148_v47 = vsel %vm1114_vm7, %v1140_v37, 0.0  ;;  %v1113_v38 = vld [vmem:[%s1828_s12] sm:$0x1] }
 0x183   : > { %1101 = vst.msk [vmem:[%s1844_s23 + $0xc] sm:$0xf] %vm1097_vm6, %v1092_v40  ;;  %v1117_v45 = vadd.f32 %v1116_v44, %v1115_v42  ;;  %v1153_v59 = vsel %vm1114_vm7, %v1143_v49, 0.0  ;;  %v1139_v44 = vld [vmem:[%s1834_s19] sm:$0x1] }
 0x184   : > { %1099 = vst.msk [vmem:[%s1844_s23 + $0x4] sm:$0xf] %vm1097_vm6, %v1090_v43  ;;  %v1149_v50 = vsel %vm1114_vm7, %v1141_v1, 0.0 }
 0x185   : > { %v1119_v51 = vadd.f32 %v1118_v46, %v1117_v45  ;;  %v1150_v53 = vadd.f32 %v1149_v50, %v1148_v47 }
 0x187   : > { %v1152_v56 = vadd.f32 %v1151_v54, %v1150_v53  ;;  %v1121_v58 = vadd.f32 %v1120_v55, %v1119_v51 }
 0x189   : > { %v1154_v60 = vadd.f32 %v1153_v59, %v1152_v56 }
 0x18e   : > { %v1450_v61 = vpop.f32.mrb[4].mxu0  ;;  %v1438_v62 = vpop.f32.mrb[4].mxu1 }
 0x18f   : > { %v1083_v63 = vadd.f32 %v1450_v61, %v1438_v62  ;;  %v1074_v26 = vpop.f32.mrb[5].mxu0  ;;  %v979_v29 = vpop.f32.mrb[5].mxu1 }
 0x190   : > { %v1075_v2 = vadd.f32 %v1074_v26, %v979_v29  ;;  %v1451_v3 = vpop.f32.mrb[6].mxu0  ;;  %v1439_v4 = vpop.f32.mrb[6].mxu1 }
 0x191   : > { %v1095_v5 = vpack.c.bf16 %v1083_v63, %v1083_v63  ;;  %v1086_v6 = vadd.f32 %v1451_v3, %v1439_v4  ;;  %v1077_v7 = vpop.f32.mrb[7].mxu0  ;;  %v982_v48 = vpop.f32.mrb[7].mxu1  ;;  %v1146_v13 = vmul.f32 %v1083_v63, %v1083_v63  ;;  %v1126_v18 = vsel %vm1114_vm7, %v1083_v63, 0.0 }
 0x192   : > { %v1093_v8 = vpack.c.bf16 %v1075_v2, %v1075_v2  ;;  %v1122_v9 = vsel %vm1114_vm7, %v1075_v2, 0.0  ;;  %v1144_v52 = vmul.f32 %v1075_v2, %v1075_v2  ;;  %v1078_v10 = vadd.f32 %v1077_v7, %v982_v48 }
 0x193   : > { %1104 = vst.msk [vmem:[%s1844_s23 + $0x18] sm:$0xf] %vm1097_vm6, %v1095_v5  ;;  %v1123_v11 = vadd.f32 %v1122_v9, %v1121_v58  ;;  %v1096_v57 = vpack.c.bf16 %v1086_v6, %v1086_v6  ;;  %v1147_v20 = vmul.f32 %v1086_v6, %v1086_v6  ;;  %v1128_v14 = vsel %vm1114_vm7, %v1086_v6, 0.0 }
 0x194   : > { %1102 = vst.msk [vmem:[%s1844_s23 + $0x10] sm:$0xf] %vm1097_vm6, %v1093_v8  ;;  %v1155_v12 = vsel %vm1114_vm7, %v1144_v52, 0.0  ;;  %v1094_v35 = vpack.c.bf16 %v1078_v10, %v1078_v10  ;;  %v1124_v41 = vsel %vm1114_vm7, %v1078_v10, 0.0  ;;  %v1145_v17 = vmul.f32 %v1078_v10, %v1078_v10 }
 0x195   : > { %v1156_v15 = vadd.f32 %v1155_v12, %v1154_v60  ;;  %1105 = vst.msk [vmem:[%s1844_s23 + $0x1c] sm:$0xf] %vm1097_vm6, %v1096_v57  ;;  %v1125_v16 = vadd.f32 %v1124_v41, %v1123_v11  ;;  %v1159_v23 = vsel %vm1114_vm7, %v1146_v13, 0.0  ;;  %v1161_v25 = vsel %vm1114_vm7, %v1147_v20, 0.0 }
 0x196   : > { %1103 = vst.msk [vmem:[%s1844_s23 + $0x14] sm:$0xf] %vm1097_vm6, %v1094_v35  ;;  %v1157_v19 = vsel %vm1114_vm7, %v1145_v17, 0.0 }
 0x197   : > { %v1127_v21 = vadd.f32 %v1126_v18, %v1125_v16  ;;  %v1158_v22 = vadd.f32 %v1157_v19, %v1156_v15 }
 0x199   : > { %v1129_v24 = vadd.f32 %v1128_v14, %v1127_v21  ;;  %v1160_v0 = vadd.f32 %v1159_v23, %v1158_v22 }
 0x19b   : > { %v1130_v27 = vrot.slane %v1129_v24, 4  ;;  %v1162_v28 = vadd.f32 %v1161_v25, %v1160_v0 }
 0x19d   : > { %v1131_v30 = vadd.f32 %v1130_v27, %v1129_v24  ;;  %v1163_v31 = vrot.slane %v1162_v28, 4 }
 0x19f   : > { %v1132_v32 = vrot.slane %v1131_v30, 2  ;;  %v1164_v33 = vadd.f32 %v1163_v31, %v1162_v28 }
 0x1a1   : > { %v1133_v34 = vadd.f32 %v1132_v32, %v1131_v30  ;;  %v1165_v36 = vrot.slane %v1164_v33, 2 }
 0x1a3   : > { %v1134_v37 = vrot.slane %v1133_v34, 1  ;;  %v1166_v39 = vadd.f32 %v1165_v36, %v1164_v33 }
 0x1a5   : > { %v1135_v40 = vadd.f32 %v1134_v37, %v1133_v34  ;;  %v1167_v42 = vrot.slane %v1166_v39, 1 }
 0x1a7   : > { %v1136_v43 = vadd.f32 %v1135_v40, %v1113_v38  ;;  %v1168_v1 = vadd.f32 %v1167_v42, %v1166_v39 }
 0x1a9   : > { %1138 = vst.msk [vmem:[%s1828_s12] sm:$0x1] %vm1110_vm0, %v1136_v43  ;;  %v1169_v45 = vadd.f32 %v1168_v1, %v1139_v44 }
 0x1ab   : > { %1170 = vst.msk [vmem:[%s1834_s19] sm:$0x1] %vm1110_vm0, %v1169_v45 }
 0x1ac PF: > { %s21_s15 = sadd.s32 1, %s1535_s15   ;;  %s1904_s13 = smov %s1531_s14 }
 0x1ad   : > { %p18_p5 = scmp.ge.s32.totalorder %s21_s15, 4   ;;  %s1905_s14 = smov %s1907_s16 }
 0x1af   :  { %20 = sbr.rel (!%p18_p5) target bundleno = 2 (0x2), region = 120 }

// kernel: encoder_block_forward.5
= control target key start
LH: loop header
LB: loop body
LE: loop exit
PB: predicated region body
PF: predicated region fallthrough
CT: control target
= control target key end

     0   :  { %s1490_s24 = smov 0   ;;  %s1492_s25 = smov 0   ;;  %s1823_s0 = inlined_call_operand.vmem [shape: bf16[2,8,8,8], index: 0, kind: input, shape index: {}, may-alias: {0,1,2}]   ;;  %s1824_s1 = inlined_call_operand.vmem [shape: bf16[2,8,8,8], index: 1, kind: input, shape index: {}, may-alias: {0,1,2}]   ;;  %s1825_s2 = inlined_call_operand.vmem [shape: bf16[2,8,8,8], index: 2, kind: input, shape index: {}, may-alias: {0,1,2}]   ;;  %s1826_s3 = inlined_call_operand.vmem [shape: f32[1,8], index: 3, kind: input, shape index: {}]   ;;  %s1827_s4 = inlined_call_operand.vmem [shape: f32[1,8], index: 4, kind: input, shape index: {}]   ;;  %s1828_s5 = inlined_call_operand.vmem [shape: bf16[3,24,8], index: 5, kind: input, shape index: {}]   ;;  %s1829_s6 = inlined_call_operand.vmem [shape: f32[1,8], index: 6, kind: input, shape index: {}]   ;;  %s1830_s7 = inlined_call_operand.vmem [shape: f32[2,8,8,8], index: 7, kind: output, shape index: {}]  }
   0x1   :  { %s1494_s26 = smov 0  }
   0x2 LB: > { %s29_s27 = sadd.s32 1, %s1442_s25  ;;  %p1242_p0 = scmp.ge.s32.totalorder %s1446_s26, 1  ;;  %s1446_s26 = sphi %s1494_s26, %s17_s26   ;;  %s1442_s25 = sphi %s1492_s25, %s1836_s25   ;;  %s1438_s24 = sphi %s1490_s24, %s1835_s24  }
   0x3   : > { %p31_p1 = scmp.ge.s32.totalorder %s29_s27, 2  ;;  %p320_p2 = scmp.lt.s32.totalorder %s1446_s26, 3 }
   0x5   : > { %s1838_s27 = smov (%p31_p1, %s29_s27), 0  ;;  %p321_p3 = pnand %p1242_p0, %p320_p2 }
   0x6   : > { %p385_p4 = scmp.lt.s32.totalorder (!%p321_p3), %s1438_s24, 1  ;;  %v1516_v0 = vld [vmem:[%s1826_s3] ss:$0 sm:$0xff] (!%p321_p3)  ;;  %s1448_s16 = smov (!%p321_p3), 8   ;;  %vm659_vm7 = vcmask (!%p321_p3), 1043456   ;;  %v1418_v55 = vld [vmem:[%s1828_s5 + $0xc] sm:$0xff] (!%p321_p3)  }
   0x7   : > { %324 = sbr.rel (%p321_p3) target bundleno = 411 (0x19b), region = 48  ;;  %v1531_v10 = vld [vmem:[%s1827_s4] ss:$0 sm:$0xff] (!%p321_p3)  ;;  %vm660_vm8 = vsmask.f32 (!%p321_p3), 3328  ;;  %1332 = vmatprep.subr.bf16.mxu1 (!%p321_p3), %v1418_v55  ;;  %vm616_vm13 = vcmask (!%p321_p3), 1040384  }
   0x8   : > { %v1578_v56 = vld [vmem:[%s1828_s5] sm:$0xff] (!%p321_p3)   ;;  %vm1592_vm10 = vmand (!%p321_p3), %vm659_vm7, %vm660_vm8  ;;  %1333 = vmatpush3.bf16.msra.mxu1 (!%p321_p3), %v1418_v55  ;;  %vm617_vm14 = vsmask.f32 (!%p321_p3), 256 }
   0x9   : > { %1344 = vmatprep.subr.bf16.mxu0 (!%p321_p3), %v1578_v56  ;;  %vm1714_vm15 = vmand (!%p321_p3), %vm616_vm13, %vm617_vm14 }
   0xa   : > { %1345 = vmatpush3.bf16.msra.mxu0 (!%p321_p3), %v1578_v56 }
   0xe   : > { %s1840_s24 = smov (!%p385_p4, %s1438_s24), 1 }
   0xf   : > { %s1511_s28 = sshll.u32 %s1840_s24, 5  ;;  %s1293_s15 = sshll.u32 %s1840_s24, 6 }
  0x10   : > { %s392_s10 = scalar_lea.vmem %s1823_s0, %s1511_s28  ;;  %s405_s13 = scalar_lea.vmem %s1824_s1, %s1511_s28 }
  0x11   : > { %v1295_v1 = vld [vmem:[%s392_s10] sm:$0xff]   ;;  %v1311_v2 = vld [vmem:[%s392_s10 + $0x8] sm:$0xff]   ;;  %v1312_v3 = vld [vmem:[%s392_s10 + $0x10] sm:$0xff]   ;;  %s1292_s21 = sadd.s32 28, %s1511_s28  ;;  %s1796_s20 = scalar_lea.vmem %s1830_s7, %s1293_s15 }
  0x12   : > { %v1297_v4 = vunpack.c.h.bf16 %v1295_v1  ;;  %v1296_v5 = vunpack.c.l.bf16 %v1295_v1  ;;  %v1300_v6 = vunpack.c.l.bf16 %v1311_v2  ;;  %v1301_v7 = vunpack.c.h.bf16 %v1311_v2  ;;  %v1526_v8 = vld [vmem:[%s392_s10 + $0x18] sm:$0xff]   ;;  %v439_v9 = vld [vmem:[%s405_s13] sm:$0xf]  ;;  %s421_s9 = scalar_lea.vmem %s1825_s2, %s1292_s21  ;;  %s1449_s10 = smov 16  }
  0x13   : > { %v1305_v11 = vunpack.c.h.bf16 %v1312_v3  ;;  %v1304_v12 = vunpack.c.l.bf16 %v1312_v3  ;;  %v1308_v13 = vunpack.c.l.bf16 %v1526_v8  ;;  %v440_v14 = vunpack.c.l.bf16 %v439_v9 }
  0x14   : > { %v479_v15 = vmul.f32 %v1297_v4, %v1516_v0  ;;  %v478_v16 = vmul.f32 %v1296_v5, %v1516_v0  ;;  %v480_v17 = vmul.f32 %v1300_v6, %v1516_v0  ;;  %v481_v18 = vmul.f32 %v1301_v7, %v1516_v0  ;;  %v1603_v7 = vld [vmem:[%s1828_s5 + $0x14] ss:$0 sps:$4 sm:$0xff]  }
  0x15   : > { %v483_v19 = vmul.f32 %v1305_v11, %v1516_v0  ;;  %v482_v20 = vmul.f32 %v1304_v12, %v1516_v0  ;;  %v484_v21 = vmul.f32 %v1308_v13, %v1516_v0  ;;  %v447_v29 = vmul.f32 %v1516_v0, %v440_v14  ;;  %v1616_v14 = vld [vmem:[%s1828_s5 + $0x8] ss:$0 sps:$4 sm:$0xff]   ;;  %1388 = vmatprep.subr.msk.bf16.mxu1 %vm659_vm7, %v1603_v7 }
  0x16   : > { %v487_v22 = vadd.f32 %v1531_v10, %v479_v15  ;;  %v486_v23 = vadd.f32 %v1531_v10, %v478_v16  ;;  %v488_v24 = vadd.f32 %v1531_v10, %v480_v17  ;;  %v489_v25 = vadd.f32 %v1531_v10, %v481_v18  ;;  %1389 = vmatprep.subr.msk.bf16.mxu0 %vm659_vm7, %v1616_v14 }
  0x17   : > { %v491_v26 = vadd.f32 %v1531_v10, %v483_v19  ;;  %v490_v27 = vadd.f32 %v1531_v10, %v482_v20  ;;  %v492_v28 = vadd.f32 %v1531_v10, %v484_v21  ;;  %v454_v42 = vadd.f32 %v1531_v10, %v447_v29 }
  0x18   : > { %vm495_vm0 = vcmp.ge.f32.partialorder %v487_v22, 0.0  ;;  %v503_v30 = vmul.f32 0.01, %v487_v22  ;;  %vm494_vm1 = vcmp.ge.f32.partialorder %v486_v23, 0.0  ;;  %v502_v31 = vmul.f32 0.01, %v486_v23 }
  0x19   : > { %vm496_vm2 = vcmp.ge.f32.partialorder %v488_v24, 0.0  ;;  %v504_v32 = vmul.f32 0.01, %v488_v24  ;;  %vm497_vm3 = vcmp.ge.f32.partialorder %v489_v25, 0.0  ;;  %v505_v33 = vmul.f32 0.01, %v489_v25 }
  0x1a   : > { %v511_v34 = vsel %vm495_vm0, %v487_v22, %v503_v30  ;;  %v510_v35 = vsel %vm494_vm1, %v486_v23, %v502_v31  ;;  %vm499_vm4 = vcmp.ge.f32.partialorder %v491_v26, 0.0  ;;  %v507_v36 = vmul.f32 0.01, %v491_v26  ;;  %v518_v30 = vld [vmem:[%s421_s9] sm:$0xf] }
  0x1b   : > { %v1549_v37 = vpack.c.bf16 %v511_v34, %v511_v34  ;;  %v1551_v38 = vpack.c.bf16 %v510_v35, %v510_v35  ;;  %v512_v39 = vsel %vm496_vm2, %v488_v24, %v504_v32  ;;  %v513_v40 = vsel %vm497_vm3, %v489_v25, %v505_v33 }
  0x1c   : > { %v1553_v41 = vpack.c.bf16 %v513_v40, %v513_v40  ;;  %vm498_vm5 = vcmp.ge.f32.partialorder %v490_v27, 0.0  ;;  %v1560_v43 = vpack.c.bf16 %v512_v39, %v512_v39  ;;  %v515_v44 = vsel %vm499_vm4, %v491_v26, %v507_v36 }
  0x1d   : > { %684 = vrot.lane.b32.xlu1 %v1549_v37, %s1448_s16  ;;  %682 = vrot.lane.b32.xlu0 %v1551_v38, %s1448_s16  ;;  %v506_v45 = vmul.f32 0.01, %v490_v27  ;;  %v554_v46 = vshll.u32 %v1549_v37, 16  ;;  %v551_v47 = vshrl.u32 %v1549_v37, 16  ;;  %vm500_vm6 = vcmp.ge.f32.partialorder %v492_v28, 0.0 }
  0x1e   : > { %v508_v48 = vmul.f32 0.01, %v492_v28  ;;  %v568_v49 = vshll.u32 %v1553_v41, 16  ;;  %v565_v53 = vshrl.u32 %v1553_v41, 16  ;;  %vm455_vm9 = vcmp.ge.f32.partialorder %v454_v42, 0.0 }
  0x1f   : > { %v514_v50 = vsel %vm498_vm5, %v490_v27, %v506_v45  ;;  %v633_v51 = vrot.slane %v554_v46, 1  ;;  %v1584_v57 = vpack.c.bf16 %v515_v44, %v515_v44  ;;  %v456_v59 = vmul.f32 0.01, %v454_v42 }
  0x20   : > { %v1567_v52 = vpack.c.bf16 %v514_v50, %v514_v50  ;;  %v637_v54 = vrot.slane %v568_v49, 1  ;;  %v516_v58 = vsel %vm500_vm6, %v492_v28, %v508_v48  ;;  %v547_v61 = vshll.u32 %v1551_v38, 16 }
  0x21   : > { %686 = vrot.lane.b32.xlu1 %v1560_v43, %s1448_s16  ;;  %688 = vrot.lane.b32.xlu0 %v1553_v41, %s1448_s16  ;;  %v634_v60 = vor.u32 %v633_v51, %v551_v47  ;;  %v553_v1 = vrot.slane %v551_v47, 7  ;;  %v457_v2 = vsel %vm455_vm9, %v454_v42, %v456_v59  ;;  %v1598_v3 = vpack.c.bf16 %v516_v58, %v516_v58 }
  0x22   : > { %v575_v62 = vshll.u32 %v1567_v52, 16  ;;  %v567_v4 = vrot.slane %v565_v53, 7  ;;  %v638_v5 = vor.u32 %v637_v54, %v565_v53  ;;  %v461_v6 = vmul.f32 0.0, %v457_v2 }
  0x23   : > { %v544_v9 = vshrl.u32 %v1551_v38, 16  ;;  %v572_v11 = vshrl.u32 %v1567_v52, 16  ;;  %v561_v12 = vshll.u32 %v1560_v43, 16  ;;  %v1309_v13 = vunpack.c.h.bf16 %v1526_v8 }
  0x24   : > { %v664_v15 = vsel %vm1592_vm10, %v634_v60, 0  ;;  %v1620_v16 = vpack.c.bf16 %v461_v6, %v461_v6  ;;  %v631_v17 = vrot.slane %v547_v61, 1  ;;  %v639_v18 = vrot.slane %v575_v62, 1 }
  0x25   : > { %692 = vrot.lane.b32.xlu1 %v1584_v57, %s1448_s16  ;;  %690 = vrot.lane.b32.xlu0 %v1567_v52, %s1448_s16  ;;  %v546_v8 = vrot.slane %v544_v9, 7  ;;  %v558_v19 = vshrl.u32 %v1560_v43, 16  ;;  %v635_v20 = vrot.slane %v561_v12, 1  ;;  %v485_v21 = vmul.f32 %v1309_v13, %v1516_v0 }
  0x26   : > { %v666_v22 = vsel %vm1592_vm10, %v638_v5, 0  ;;  %v537_v23 = vshrl.u32 %v1620_v16, 16  ;;  %v540_v24 = vshll.u32 %v1620_v16, 16  ;;  %v582_v25 = vshll.u32 %v1584_v57, 16 }
  0x27   : > { %v574_v26 = vrot.slane %v572_v11, 7  ;;  %v560_v27 = vrot.slane %v558_v19, 7  ;;  %v493_v28 = vadd.f32 %v1531_v10, %v485_v21  ;;  %v579_v29 = vshrl.u32 %v1584_v57, 16 }
  0x28   : > { %v629_v31 = vrot.slane %v540_v24, 1  ;;  %v632_v32 = vor.u32 %v631_v17, %v544_v9  ;;  %v640_v33 = vor.u32 %v639_v18, %v572_v11  ;;  %v586_v34 = vshrl.u32 %v1598_v3, 16 }
  0x29   : > { %708 = vrot.lane.b32.xlu1 %v664_v15, %s1449_s10  ;;  %694 = vrot.lane.b32.xlu0 %v1598_v3, %s1448_s16  ;;  %v636_v35 = vor.u32 %v635_v20, %v558_v19  ;;  %vm501_vm11 = vcmp.ge.f32.partialorder %v493_v28, 0.0  ;;  %v509_v36 = vmul.f32 0.01, %v493_v28  ;;  %v581_v38 = vrot.slane %v579_v29, 7 }
  0x2a   : > { %v630_v39 = vor.u32 %v629_v31, %v537_v23  ;;  %v641_v40 = vrot.slane %v582_v25, 1  ;;  %v519_v42 = vunpack.c.l.bf16 %v518_v30  ;;  %v1646_v43 = vor.u32 %v554_v46, %v553_v1 }
  0x2b   : > { %v517_v44 = vsel %vm501_vm11, %v493_v28, %v509_v36  ;;  %v589_v45 = vshll.u32 %v1598_v3, 16  ;;  %v1652_v47 = vor.u32 %v547_v61, %v546_v8  ;;  %v1654_v48 = vor.u32 %v561_v12, %v560_v27 }
  0x2c   : > { %v662_v50 = vsel %vm1592_vm10, %v630_v39, 0  ;;  %v663_v37 = vsel %vm1592_vm10, %v632_v32, 0  ;;  %v534_v46 = vpack.c.bf16 %v517_v44, %v517_v44  ;;  %v520_v51 = vmul.f32 %v1516_v0, %v519_v42 }
  0x2d   : > { %712 = vrot.lane.b32.xlu1 %v666_v22, %s1449_s10  ;;  %680 = vrot.lane.b32.xlu0 %v1620_v16, %s1448_s16  ;;  %v539_v53 = vrot.slane %v537_v23, 7  ;;  %v667_v54 = vsel %vm1592_vm10, %v640_v33, 0  ;;  %v588_v55 = vrot.slane %v586_v34, 7  ;;  %v1665_v57 = vor.u32 %v568_v49, %v567_v4 }
  0x2e   : > { %v665_v58 = vsel %vm1592_vm10, %v636_v35, 0  ;;  %v593_v59 = vshrl.u32 %v534_v46, 16  ;;  %v596_v60 = vshll.u32 %v534_v46, 16  ;;  %v521_v61 = vadd.f32 %v1531_v10, %v520_v51  ;;  %v1683_v10 = vld [vmem:[%s1828_s5 + $0x18] sm:$0xff]  }
  0x2f   : > { %v642_v0 = vor.u32 %v641_v40, %v579_v29  ;;  %v643_v1 = vrot.slane %v589_v45, 1  ;;  %v1672_v2 = vor.u32 %v582_v25, %v581_v38  ;;  %v1676_v41 = vor.u32 %v575_v62, %v574_v26 }
  0x30   : > { %v595_v49 = vrot.slane %v593_v59, 7  ;;  %v645_v3 = vrot.slane %v596_v60, 1  ;;  %vm522_vm12 = vcmp.ge.f32.partialorder %v521_v61, 0.0  ;;  %v523_v4 = vmul.f32 0.01, %v521_v61 }
  0x31   : > { %704 = vrot.lane.b32.xlu1 %v662_v50, %s1449_s10  ;;  %706 = vrot.lane.b32.xlu0 %v663_v37, %s1449_s10  ;;  %v1678_v5 = vor.u32 %v589_v45, %v588_v55  ;;  %v542_v6 = vor.u32 %v540_v24, %v539_v53  ;;  %v824_v11 = vsel %vm659_vm7, %v1603_v7, 0  ;;  %v1689_v52 = vsel %vm659_vm7, %v1616_v14, 0 }
  0x32   : > { %v524_v9 = vsel %vm522_vm12, %v521_v61, %v523_v4  ;;  %v668_v12 = vsel %vm1592_vm10, %v642_v0, 0  ;;  %v646_v13 = vor.u32 %v645_v3, %v593_v59  ;;  %v644_v15 = vor.u32 %v643_v1, %v586_v34  ;;  %1335 = vmatpush3.bf16.msra.mxu1 %v824_v11  ;;  %1347 = vmatpush3.bf16.msra.mxu0 %v1689_v52  ;;  %v1423_v4 = vld [vmem:[%s1828_s5 + $0x20] ss:$0 sps:$4 sm:$0xff]  }
  0x33   : > { %v525_v62 = vmul.f32 0.0, %v524_v9  ;;  %v1696_v16 = vor.u32 %v596_v60, %v595_v49  ;;  %1368 = vmatprep.subr.bf16.mxu1 %v1578_v56  ;;  %1356 = vmatprep.subr.bf16.mxu0 %v1683_v10  ;;  %vm720_vm0 = vcmask 64512   ;;  %v621_v35 = vsel %vm1714_vm15, 0, %v1646_v43 }
  0x34   : > { %v670_v8 = vsel %vm1592_vm10, %v646_v13, 0  ;;  %v669_v19 = vsel %vm1592_vm10, %v644_v15, 0  ;;  %v620_v36 = vsel %vm1714_vm15, 0, %v1652_v47  ;;  %v619_v38 = vsel %vm1714_vm15, 0, %v542_v6 }
  0x35   : > { %714 = vrot.lane.b32.xlu1 %v667_v54, %s1449_s10  ;;  %710 = vrot.lane.b32.xlu0 %v665_v58, %s1449_s10  ;;  %v535_v7 = vpack.c.bf16 %v525_v62, %v525_v62  ;;  %vm745_vm1 = vcmask 130048   ;;  %v622_v39 = vsel %vm1714_vm15, 0, %v1654_v48  ;;  %v623_v40 = vsel %vm1714_vm15, 0, %v1665_v57 }
  0x36   : > { %v624_v44 = vsel %vm1714_vm15, 0, %v1676_v41  ;;  %vm809_vm2 = vcmask 195584   ;;  %v625_v60 = vsel %vm1714_vm15, 0, %v1672_v2  ;;  %v626_v2 = vsel %vm1714_vm15, 0, %v1678_v5 }
  0x37   : > { %v600_v17 = vshrl.u32 %v535_v7, 16  ;;  %v603_v18 = vshll.u32 %v535_v7, 16  ;;  %v627_v62 = vsel %vm1714_vm15, 0, %v1696_v16  ;;  %v1017_v15 = vsel %vm659_vm7, %v1423_v4, 0 }
  0x39   : > { %766 = vrot.lane.b32.xlu1 %v534_v46, %s1448_s16  ;;  %716 = vrot.lane.b32.xlu0 %v668_v12, %s1449_s10  ;;  %v602_v20 = vrot.slane %v600_v17, 7  ;;  %v647_v21 = vrot.slane %v603_v18, 1 }
  0x3b   : > { %v648_v22 = vor.u32 %v647_v21, %v600_v17  ;;  %v1708_v23 = vor.u32 %v603_v18, %v602_v20 }
  0x3d   : > { %769 = vrot.lane.b32.xlu1 %v670_v8, %s1449_s10  ;;  %718 = vrot.lane.b32.xlu0 %v669_v19, %s1449_s10  ;;  %v671_v24 = vsel %vm1592_vm10, %v648_v22, 0 }
  0x41   : > { %987 = vrot.lane.b32.xlu0 %v535_v7, %s1448_s16  ;;  %990 = vrot.lane.b32.xlu1 %v671_v24, %s1449_s10 }
  0x8f   : > { %v685_v25 = vpop.permute.xlu1 %684  ;;  %v683_v26 = vpop.permute.xlu0 %682 }
  0x90   : > { %v729_v42 = vsel %vm720_vm0, %v621_v35, %v685_v25  ;;  %v726_v43 = vsel %vm720_vm0, %v620_v36, %v683_v26 }
  0x93   : > { %v687_v27 = vpop.permute.xlu1 %686  ;;  %v689_v28 = vpop.permute.xlu0 %688 }
  0x94   : > { %v732_v54 = vsel %vm720_vm0, %v622_v39, %v687_v27  ;;  %v735_v55 = vsel %vm720_vm0, %v623_v40, %v689_v28  ;;  %v1286_v28 = vld [vmem:[%s1829_s6] ss:$0 sm:$0xff] }
  0x97   : > { %v693_v29 = vpop.permute.xlu1 %692  ;;  %v691_v30 = vpop.permute.xlu0 %690 }
  0x98   : > { %v738_v57 = vsel %vm720_vm0, %v624_v44, %v691_v30  ;;  %v741_v6 = vsel %vm720_vm0, %v625_v60, %v693_v29 }
  0x9b   : > { %v709_v31 = vpop.permute.xlu1 %708  ;;  %v695_v32 = vpop.permute.xlu0 %694 }
  0x9c   : > { %v751_v37 = vsel %vm745_vm1, %v729_v42, %v709_v31  ;;  %v744_v5 = vsel %vm720_vm0, %v626_v2, %v695_v32 }
  0x9f   : > { %v713_v63 = vpop.permute.xlu1 %712  ;;  %v681_v34 = vpop.permute.xlu0 %680 }
  0xa0   : > { %v723_v45 = vsel %vm720_vm0, %v619_v38, %v681_v34  ;;  %v755_v61 = vsel %vm745_vm1, %v735_v55, %v713_v63 }
  0xa3   : > { %v705_v47 = vpop.permute.xlu1 %704  ;;  %v707_v50 = vpop.permute.xlu0 %706 }
  0xa4   : > { %v747_v48 = vsel %vm745_vm1, %v723_v45, %v705_v47  ;;  %v749_v46 = vsel %vm745_vm1, %v726_v43, %v707_v50 }
  0xa5   : > { %v1256_v51 = vcombine.low %v749_v46, %v751_v37  ;;  %v1266_v53 = vcombine.low %v747_v48, %v749_v46 }
  0xa7   : > { %v715_v58 = vpop.permute.xlu1 %714  ;;  %v711_v59 = vpop.permute.xlu0 %710  ;;  %1336 = vmatprep.mubr.msk.bf16.mxu1 %vm809_vm2, %v1256_v51  ;;  %1348 = vmatprep.mubr.msk.bf16.mxu0 %vm809_vm2, %v1266_v53 }
  0xa8   : > { %v757_v0 = vsel %vm745_vm1, %v738_v57, %v715_v58  ;;  %v753_v1 = vsel %vm745_vm1, %v732_v54, %v711_v59 }
  0xa9   : > { %v1268_v41 = vcombine.low %v755_v61, %v757_v0  ;;  %v1257_v49 = vcombine.low %v753_v1, %v755_v61  ;;  %v1267_v3 = vcombine.low %v751_v37, %v753_v1 }
  0xab   : > { %v767_v9 = vpop.permute.xlu1 %766  ;;  %v717_v11 = vpop.permute.xlu0 %716  ;;  %1337 = vmatmul.mubr.msk.bf16.vlgmr.msra.gmra.mrb[0].mxu1 %vm809_vm2, %v1257_v49  ;;  %1349 = vmatmul.mubr.msk.bf16.vlgmr.msra.gmra.mrb[0].mxu0 %vm809_vm2, %v1267_v3 }
  0xac   : > { %v759_v12 = vsel %vm745_vm1, %v741_v6, %v717_v11  ;;  %1370 = vmatpush3.bf16.msra.mxu1 %v1578_v56  ;;  %1357 = vmatpush3.bf16.msra.mxu0 %v1683_v10  ;;  %v773_v16 = vsel %vm720_vm0, %v627_v62, %v767_v9 }
  0xad   : > { %v1258_v13 = vcombine.low %v757_v0, %v759_v12  ;;  %1360 = vmatprep.mubr.msk.bf16.mxu0 %vm809_vm2, %v1267_v3  ;;  %1391 = vmatprep.subr.msk.bf16.mxu0 %vm659_vm7, %v1423_v4 }
  0xae   : > { %1390 = vmatprep.subr.msk.bf16.mxu1 %vm659_vm7, %v1616_v14  ;;  %v628_v14 = vsel %vm1714_vm15, 0, %v1708_v23 }
  0xaf   : > { %v770_v7 = vpop.permute.xlu1 %769  ;;  %v719_v17 = vpop.permute.xlu0 %718  ;;  %1340 = vmatprep.mubr.msk.bf16.mxu1 %vm809_vm2, %v1258_v13 }
  0xb0   : > { %v775_v56 = vsel %vm745_vm1, %v773_v16, %v770_v7  ;;  %v761_v10 = vsel %vm745_vm1, %v744_v5, %v719_v17  ;;  %1359 = vmatpush3.bf16.msra.mxu0 %v1017_v15  ;;  %1371 = vmatpush3.bf16.msra.mxu1 %v1689_v52 }
  0xb1   : > { %v1259_v18 = vcombine.low %v761_v10, %v775_v56  ;;  %v1269_v8 = vcombine.low %v759_v12, %v761_v10 }
  0xb3   : > { %v988_v19 = vpop.permute.xlu0 %987  ;;  %1341 = vmatmul.mubr.msk.bf16.gmra.mrb[4].mxu1 %vm809_vm2, %v1259_v18  ;;  %v991_v20 = vpop.permute.xlu1 %990 }
  0xb4   : > { %v994_v21 = vsel %vm720_vm0, %v628_v14, %v988_v19  ;;  %1352 = vmatprep.mubr.msk.bf16.mxu1 %vm809_vm2, %v1268_v41 }
  0xb5   : > { %v996_v22 = vsel %vm745_vm1, %v994_v21, %v991_v20 }
  0xb6   : > { %v1279_v24 = vcombine.low %v775_v56, %v996_v22 }
  0xb7   : > { %1361 = vmatmul.mubr.msk.bf16.vlgmr.msra.gmra.mrb[0].mxu0 %vm809_vm2, %v1268_v41 }
  0xb8   : > { %1364 = vmatprep.mubr.msk.bf16.mxu0 %vm809_vm2, %v1269_v8 }
  0xbf   : > { %1353 = vmatmul.mubr.msk.bf16.vlgmr.msra.gmra.mrb[4].mxu1 %vm809_vm2, %v1269_v8  ;;  %1365 = vmatmul.mubr.msk.bf16.gmra.mrb[4].mxu0 %vm809_vm2, %v1279_v24 }
 0x17e   : > { %v1338_v52 = vpop.f32.mrb[0].mxu1 }
 0x17f   : > { %v860_v23 = vpop.f32.mrb[1].mxu1 }
 0x180   : > { %v1339_v25 = vpop.f32.mrb[2].mxu1 }
 0x181   : > { %v863_v26 = vpop.f32.mrb[3].mxu1 }
 0x18a   : > { %v1362_v27 = vpop.f32.mrb[0].mxu0 }
 0x18b   : > { %v1372_v29 = vadd.f32 %v1362_v27, %v1338_v52  ;;  %v1053_v30 = vpop.f32.mrb[1].mxu0 }
 0x18c   : > { %v1373_v31 = vadd.f32 %v1053_v30, %v860_v23  ;;  %v1363_v32 = vpop.f32.mrb[2].mxu0 }
 0x18d   : > { %v1101_v33 = vadd.f32 %v1372_v29, %v1286_v28  ;;  %v1374_v63 = vadd.f32 %v1363_v32, %v1339_v25  ;;  %v1056_v34 = vpop.f32.mrb[3].mxu0 }
 0x18e   : > { %v1099_v35 = vadd.f32 %v1373_v31, %v1286_v28  ;;  %v1375_v36 = vadd.f32 %v1056_v34, %v863_v26 }
 0x18f   : > { %1109 = vst.msk [vmem:[%s1796_s20 + $0x10] sm:$0xff] %vm720_vm0, %v1101_v33  ;;  %v1102_v38 = vadd.f32 %v1374_v63, %v1286_v28 }
 0x190   : > { %1107 = vst.msk [vmem:[%s1796_s20] sm:$0xff] %vm720_vm0, %v1099_v35  ;;  %v1100_v39 = vadd.f32 %v1375_v36, %v1286_v28 }
 0x191   : > { %1110 = vst.msk [vmem:[%s1796_s20 + $0x18] sm:$0xff] %vm720_vm0, %v1102_v38 }
 0x192   : > { %1108 = vst.msk [vmem:[%s1796_s20 + $0x8] sm:$0xff] %vm720_vm0, %v1100_v39  ;;  %v1354_v40 = vpop.f32.mrb[4].mxu1  ;;  %v1366_v42 = vpop.f32.mrb[4].mxu0 }
 0x193   : > { %v1376_v43 = vadd.f32 %v1366_v42, %v1354_v40  ;;  %v971_v44 = vpop.f32.mrb[5].mxu1  ;;  %v1069_v45 = vpop.f32.mrb[5].mxu0 }
 0x194   : > { %v1377_v47 = vadd.f32 %v1069_v45, %v971_v44  ;;  %v1355_v50 = vpop.f32.mrb[6].mxu1  ;;  %v1367_v37 = vpop.f32.mrb[6].mxu0 }
 0x195   : > { %v1105_v48 = vadd.f32 %v1376_v43, %v1286_v28  ;;  %v1378_v46 = vadd.f32 %v1367_v37, %v1355_v50  ;;  %v974_v51 = vpop.f32.mrb[7].mxu1  ;;  %v1072_v53 = vpop.f32.mrb[7].mxu0 }
 0x196   : > { %v1103_v54 = vadd.f32 %v1377_v47, %v1286_v28  ;;  %v1379_v55 = vadd.f32 %v1072_v53, %v974_v51 }
 0x197   : > { %1113 = vst.msk [vmem:[%s1796_s20 + $0x30] sm:$0xff] %vm720_vm0, %v1105_v48  ;;  %v1106_v57 = vadd.f32 %v1378_v46, %v1286_v28 }
 0x198   : > { %1111 = vst.msk [vmem:[%s1796_s20 + $0x20] sm:$0xff] %vm720_vm0, %v1103_v54  ;;  %v1104_v58 = vadd.f32 %v1379_v55, %v1286_v28 }
 0x199   : > { %1114 = vst.msk [vmem:[%s1796_s20 + $0x38] sm:$0xff] %vm720_vm0, %v1106_v57 }
 0x19a   : > { %1112 = vst.msk [vmem:[%s1796_s20 + $0x28] sm:$0xff] %vm720_vm0, %v1104_v58 }
 0x19b PF: > { %s17_s26 = sadd.s32 1, %s1446_s26   ;;  %s1835_s24 = smov %s1442_s25 }
 0x19c   : > { %p14_p5 = scmp.ge.s32.totalorder %s17_s26, 4   ;;  %s1836_s25 = smov %s1838_s27 }
 0x19e   :  { %16 = sbr.rel (!%p14_p5) target bundleno = 2 (0x2), region = 86 }

</bundles_post_ra>
